<compile_context>
chip_gen: v7x
topology: tpu7x:2x2x1
jax: 0.10.0
libtpu: 0.0.40
codegen_flags: <defaults>
</compile_context>

<pallas_src>
import jax
import jax.numpy as jnp
from jax.experimental import pallas as pl
from jax.experimental.pallas import tpu as pltpu


def _round_up(x, m):
    return ((x + m - 1) // m) * m


# ----------------------------------------------------------------------------
# Fused kernel factory: 3 LSTM layers + decoder, everything VMEM-resident.
# Kernel refs: x2d, (wih, whh, b) * num_layers, wdec, bdec, out, seq_scratch.
# ----------------------------------------------------------------------------
def _make_fused_lstm_kernel(num_layers, T, Bp, H, use_bf16_matmul=False):
    mm_dtype = jnp.bfloat16 if use_bf16_matmul else jnp.float32

    def kernel(*refs):
        x_ref = refs[0]
        layer_refs = refs[1:1 + 3 * num_layers]
        wdec_ref = refs[1 + 3 * num_layers]
        bdec_ref = refs[2 + 3 * num_layers]
        out_ref = refs[3 + 3 * num_layers]
        seq_ref = refs[4 + 3 * num_layers]              # VMEM scratch (T*Bp, H)

        def run_layer(inp2d, wih_ref, whh_ref, b_ref):
            wih = wih_ref[...].astype(mm_dtype)
            whh = whh_ref[...].astype(mm_dtype)

            # Input projection + bias for ALL timesteps at once (hoisted out of
            # the recurrence): one well-shaped MXU matmul, one bias add.
            gx = (
                jnp.dot(inp2d.astype(mm_dtype), wih,
                        preferred_element_type=jnp.float32)
                + b_ref[...]
            )                                           # (T*Bp, 4H) f32

            h = jnp.zeros((Bp, H), jnp.float32)
            c = jnp.zeros((Bp, H), jnp.float32)
            # T is small and static -> fully unrolled at trace time; all slices
            # are static and tile-aligned (Bp multiple of 8, 4H multiple of 128).
            for t in range(T):
                gates = gx[t * Bp:(t + 1) * Bp, :] + jnp.dot(
                    h.astype(mm_dtype), whh,
                    preferred_element_type=jnp.float32)  # (Bp, 4H)
                # Two full-vreg transcendentals instead of four partial ones;
                # elementwise math stays f32 (v5e-safe).
                s = jax.nn.sigmoid(gates)
                th = jnp.tanh(gates)
                i = s[:, 0 * H:1 * H]
                f = s[:, 1 * H:2 * H]
                g = th[:, 2 * H:3 * H]
                o = s[:, 3 * H:4 * H]
                c = f * c + i * g
                h = o * jnp.tanh(c)
                seq_ref[t * Bp:(t + 1) * Bp, :] = h
            return seq_ref[...]                         # (T*Bp, H)

        cur = x_ref[...].astype(jnp.float32)            # (T*Bp, D)
        for layer in range(num_layers):
            wih_ref, whh_ref, b_ref = layer_refs[3 * layer:3 * layer + 3]
            cur = run_layer(cur, wih_ref, whh_ref, b_ref)

        # Fused decoder: (T*Bp, H) @ (H, OUTP) + b.  OUTP is lane-padded to a
        # multiple of 128 -> single unmasked lane-dense store.
        out_ref[...] = (
            jnp.dot(cur.astype(mm_dtype), wdec_ref[...].astype(mm_dtype),
                    preferred_element_type=jnp.float32)
            + bdec_ref[...]
        ).astype(out_ref.dtype)

    return kernel


# ----------------------------------------------------------------------------
# Full module forward
# ----------------------------------------------------------------------------
def lstm_model_forward(x, params, use_bf16_matmul=False):
    """x: (T, B, in_dim) f32.  Returns decoder(lstm3(x)).squeeze()."""
    T, B, D = x.shape
    layers = params["layers"]
    num_layers = len(layers)
    H = layers[0][1].shape[0]
    out_dim = params["w_dec_t"].shape[1]

    Bp = _round_up(max(B, 1), 8)            # sublane padding
    OUTP = _round_up(max(out_dim, 1), 128)  # lane-dense output slab

    # Pad batch to the sublane width and flatten (T, Bp) so the hoisted input
    # projection is one big matmul.  Padded rows are independent and sliced off.
    xp = jnp.zeros((T, Bp, D), jnp.float32).at[:, :B, :].set(x.astype(jnp.float32))
    x2d = xp.reshape(T * Bp, D)

    wdec = jnp.zeros((H, OUTP), jnp.float32).at[:, :out_dim].set(params["w_dec_t"])
    bdec = jnp.zeros((1, OUTP), jnp.float32).at[:, :out_dim].set(params["b_dec"])

    kernel = _make_fused_lstm_kernel(num_layers, T, Bp, H, use_bf16_matmul)

    inputs = [x2d]
    for (w_ih_t, w_hh_t, b) in layers:
        inputs += [w_ih_t, w_hh_t, b]
    inputs += [wdec, bdec]

    # Single grid step: every array is a whole-block VMEM resident (a few tens
    # of KiB total -- far under even v7x's 64 MiB VMEM).
    # TODO(synk): if hidden_dim grows large, tile the 4H axis / set
    # vmem_limit_bytes and shard a leading batch axis across v7x's 2 TCs.
    out_slab = pl.pallas_call(
        kernel,
        out_shape=jax.ShapeDtypeStruct((T * Bp, OUTP), jnp.float32),
        scratch_shapes=[pltpu.VMEM((T * Bp, H), jnp.float32)],   # layer seq buf
    )(*inputs)

    out = out_slab[:, :out_dim].reshape(T, Bp, out_dim)[:, :B, :]
    return jnp.squeeze(out)                             # mimics torch .squeeze()


# ----------------------------------------------------------------------------
# Deterministic parameter init (uniform(-1/sqrt(H), 1/sqrt(H)), like PyTorch)
# ----------------------------------------------------------------------------
def init_params(key, in_dim, hidden_dim, out_dim, num_layers=3):
    k = 1.0 / jnp.sqrt(hidden_dim)
    layers = []
    for layer in range(num_layers):
        d_in = in_dim if layer == 0 else hidden_dim
        key, k1, k2, k3, k4 = jax.random.split(key, 5)
        w_ih = jax.random.uniform(k1, (4 * hidden_dim, d_in), jnp.float32, -k, k)
        w_hh = jax.random.uniform(k2, (4 * hidden_dim, hidden_dim), jnp.float32, -k, k)
        b_ih = jax.random.uniform(k3, (4 * hidden_dim,), jnp.float32, -k, k)
        b_hh = jax.random.uniform(k4, (4 * hidden_dim,), jnp.float32, -k, k)
        layers.append((w_ih.T, w_hh.T, (b_ih + b_hh).reshape(1, -1)))
    key, k5, k6 = jax.random.split(key, 3)
    kd = 1.0 / jnp.sqrt(hidden_dim)
    w_dec = jax.random.uniform(k5, (out_dim, hidden_dim), jnp.float32, -kd, kd)
    b_dec = jax.random.uniform(k6, (out_dim,), jnp.float32, -kd, kd)
    return {"layers": layers, "w_dec_t": w_dec.T, "b_dec": b_dec.reshape(1, -1)}


# ----------------------------------------------------------------------------
# Pure-JAX reference (for correctness check)
# ----------------------------------------------------------------------------
def reference_forward(x, params):
    h_seq = x
    for (w_ih_t, w_hh_t, b) in params["layers"]:
        T, B, _ = h_seq.shape
        H = w_hh_t.shape[0]

        def step(carry, xt):
            h, c = carry
            gates = xt @ w_ih_t + h @ w_hh_t + b
            i = jax.nn.sigmoid(gates[:, 0 * H:1 * H])
            f = jax.nn.sigmoid(gates[:, 1 * H:2 * H])
            g = jnp.tanh(gates[:, 2 * H:3 * H])
            o = jax.nn.sigmoid(gates[:, 3 * H:4 * H])
            c = f * c + i * g
            h = o * jnp.tanh(c)
            return (h, c), h

        init = (jnp.zeros((B, H), jnp.float32), jnp.zeros((B, H), jnp.float32))
        _, h_seq = jax.lax.scan(step, init, h_seq)
    out = h_seq @ params["w_dec_t"] + params["b_dec"]
    return jnp.squeeze(out)


if __name__ == "__main__":
    T, B = 8, 4
    in_dim, hidden_dim, out_dim = 16, 32, 1

    key = jax.random.PRNGKey(0)
    key, kx = jax.random.split(key)
    x = jax.random.normal(kx, (T, B, in_dim), jnp.float32)

    params = init_params(key, in_dim, hidden_dim, out_dim, num_layers=3)

    out = lstm_model_forward(x, params)       # f32 MXU path (exact vs reference)
    out = jax.block_until_ready(out)

    ref = reference_forward(x, params)
    assert out.shape == ref.shape == (T, B), (out.shape, ref.shape)
    assert jnp.allclose(out, ref, atol=2e-5, rtol=2e-5), "mismatch vs reference"

    print("KERNEL_OK")
</pallas_src>

<mosaic_0001>
module attributes {stable_mosaic.version = 11 : i64} {
  func.func @kernel(%arg0: memref<64x16xf32, #tpu.memory_space<vmem>>, %arg1: memref<16x128xf32, #tpu.memory_space<vmem>>, %arg2: memref<32x128xf32, #tpu.memory_space<vmem>>, %arg3: memref<1x128xf32, #tpu.memory_space<vmem>>, %arg4: memref<32x128xf32, #tpu.memory_space<vmem>>, %arg5: memref<32x128xf32, #tpu.memory_space<vmem>>, %arg6: memref<1x128xf32, #tpu.memory_space<vmem>>, %arg7: memref<32x128xf32, #tpu.memory_space<vmem>>, %arg8: memref<32x128xf32, #tpu.memory_space<vmem>>, %arg9: memref<1x128xf32, #tpu.memory_space<vmem>>, %arg10: memref<32x128xf32, #tpu.memory_space<vmem>>, %arg11: memref<1x128xf32, #tpu.memory_space<vmem>>, %arg12: memref<64x128xf32, #tpu.memory_space<vmem>>, %arg13: memref<64x32xf32, #tpu.memory_space<vmem>>) attributes {dimension_semantics = [], scalar_prefetch = 0 : i64, scratch_operands = 1 : i64, tpu.core_type = #tpu.core_type<tc>} {
    %c0 = arith.constant 0 : index
    %c0_0 = arith.constant 0 : index
    %0 = vector.load %arg0[%c0, %c0_0] : memref<64x16xf32, #tpu.memory_space<vmem>>, vector<64x16xf32>
    %c0_1 = arith.constant 0 : index
    %c0_2 = arith.constant 0 : index
    %1 = vector.load %arg1[%c0_1, %c0_2] : memref<16x128xf32, #tpu.memory_space<vmem>>, vector<16x128xf32>
    %c0_3 = arith.constant 0 : index
    %c0_4 = arith.constant 0 : index
    %2 = vector.load %arg2[%c0_3, %c0_4] : memref<32x128xf32, #tpu.memory_space<vmem>>, vector<32x128xf32>
    %cst = arith.constant dense<0.000000e+00> : vector<64x128xf32>
    %3 = tpu.matmul %0, %1, %cst {dimension_numbers = #tpu.dot_dimension_numbers<[1], [0], [0], [1], [0, 0, 1, 1], [], []>} : vector<64x16xf32>, vector<16x128xf32>, vector<64x128xf32> -> vector<64x128xf32>
    %c0_5 = arith.constant 0 : index
    %c0_6 = arith.constant 0 : index
    %4 = vector.load %arg3[%c0_5, %c0_6] : memref<1x128xf32, #tpu.memory_space<vmem>>, vector<1x128xf32>
    %5 = vector.broadcast %4 : vector<1x128xf32> to vector<64x128xf32>
    %6 = arith.addf %3, %5 : vector<64x128xf32>
    %cst_7 = arith.constant 0.000000e+00 : f32
    %7 = vector.broadcast %cst_7 : f32 to vector<8x32xf32>
    %cst_8 = arith.constant 0.000000e+00 : f32
    %8 = vector.broadcast %cst_8 : f32 to vector<8x32xf32>
    %9 = vector.extract_strided_slice %6 {offsets = [0, 0], sizes = [8, 128], strides = [1, 1]} : vector<64x128xf32> to vector<8x128xf32>
    %cst_9 = arith.constant dense<0.000000e+00> : vector<8x128xf32>
    %10 = tpu.matmul %7, %2, %cst_9 {dimension_numbers = #tpu.dot_dimension_numbers<[1], [0], [0], [1], [0, 0, 1, 1], [], []>} : vector<8x32xf32>, vector<32x128xf32>, vector<8x128xf32> -> vector<8x128xf32>
    %11 = arith.addf %9, %10 : vector<8x128xf32>
    %12 = arith.negf %11 : vector<8x128xf32>
    %13 = math.exp %12 : vector<8x128xf32>
    %cst_10 = arith.constant 1.000000e+00 : f32
    %14 = vector.broadcast %cst_10 : f32 to vector<8x128xf32>
    %15 = arith.addf %14, %13 : vector<8x128xf32>
    %16 = arith.divf %14, %15 : vector<8x128xf32>
    %17 = math.tanh %11 : vector<8x128xf32>
    %18 = vector.extract_strided_slice %16 {offsets = [0, 0], sizes = [8, 32], strides = [1, 1]} : vector<8x128xf32> to vector<8x32xf32>
    %19 = vector.extract_strided_slice %16 {offsets = [0, 32], sizes = [8, 32], strides = [1, 1]} : vector<8x128xf32> to vector<8x32xf32>
    %20 = vector.extract_strided_slice %17 {offsets = [0, 64], sizes = [8, 32], strides = [1, 1]} : vector<8x128xf32> to vector<8x32xf32>
    %21 = vector.extract_strided_slice %16 {offsets = [0, 96], sizes = [8, 32], strides = [1, 1]} : vector<8x128xf32> to vector<8x32xf32>
    %22 = arith.mulf %19, %8 : vector<8x32xf32>
    %23 = arith.mulf %18, %20 : vector<8x32xf32>
    %24 = arith.addf %22, %23 : vector<8x32xf32>
    %25 = math.tanh %24 : vector<8x32xf32>
    %26 = arith.mulf %21, %25 : vector<8x32xf32>
    %c0_11 = arith.constant 0 : index
    %c0_12 = arith.constant 0 : index
    %27 = vector.load %arg13[%c0_11, %c0_12] : memref<64x32xf32, #tpu.memory_space<vmem>>, vector<8x32xf32>
    tpu.vector_store %arg13[%c0_11, %c0_12], %26 {strides = array<i32>} : memref<64x32xf32, #tpu.memory_space<vmem>>, vector<8x32xf32>,
    %28 = vector.extract_strided_slice %6 {offsets = [8, 0], sizes = [8, 128], strides = [1, 1]} : vector<64x128xf32> to vector<8x128xf32>
    %cst_13 = arith.constant dense<0.000000e+00> : vector<8x128xf32>
    %29 = tpu.matmul %26, %2, %cst_13 {dimension_numbers = #tpu.dot_dimension_numbers<[1], [0], [0], [1], [0, 0, 1, 1], [], []>} : vector<8x32xf32>, vector<32x128xf32>, vector<8x128xf32> -> vector<8x128xf32>
    %30 = arith.addf %28, %29 : vector<8x128xf32>
    %31 = arith.negf %30 : vector<8x128xf32>
    %32 = math.exp %31 : vector<8x128xf32>
    %cst_14 = arith.constant 1.000000e+00 : f32
    %33 = vector.broadcast %cst_14 : f32 to vector<8x128xf32>
    %34 = arith.addf %33, %32 : vector<8x128xf32>
    %35 = arith.divf %33, %34 : vector<8x128xf32>
    %36 = math.tanh %30 : vector<8x128xf32>
    %37 = vector.extract_strided_slice %35 {offsets = [0, 0], sizes = [8, 32], strides = [1, 1]} : vector<8x128xf32> to vector<8x32xf32>
    %38 = vector.extract_strided_slice %35 {offsets = [0, 32], sizes = [8, 32], strides = [1, 1]} : vector<8x128xf32> to vector<8x32xf32>
    %39 = vector.extract_strided_slice %36 {offsets = [0, 64], sizes = [8, 32], strides = [1, 1]} : vector<8x128xf32> to vector<8x32xf32>
    %40 = vector.extract_strided_slice %35 {offsets = [0, 96], sizes = [8, 32], strides = [1, 1]} : vector<8x128xf32> to vector<8x32xf32>
    %41 = arith.mulf %38, %24 : vector<8x32xf32>
    %42 = arith.mulf %37, %39 : vector<8x32xf32>
    %43 = arith.addf %41, %42 : vector<8x32xf32>
    %44 = math.tanh %43 : vector<8x32xf32>
    %45 = arith.mulf %40, %44 : vector<8x32xf32>
    %c8 = arith.constant 8 : index
    %c0_15 = arith.constant 0 : index
    %46 = vector.load %arg13[%c8, %c0_15] : memref<64x32xf32, #tpu.memory_space<vmem>>, vector<8x32xf32>
    tpu.vector_store %arg13[%c8, %c0_15], %45 {strides = array<i32>} : memref<64x32xf32, #tpu.memory_space<vmem>>, vector<8x32xf32>,
    %47 = vector.extract_strided_slice %6 {offsets = [16, 0], sizes = [8, 128], strides = [1, 1]} : vector<64x128xf32> to vector<8x128xf32>
    %cst_16 = arith.constant dense<0.000000e+00> : vector<8x128xf32>
    %48 = tpu.matmul %45, %2, %cst_16 {dimension_numbers = #tpu.dot_dimension_numbers<[1], [0], [0], [1], [0, 0, 1, 1], [], []>} : vector<8x32xf32>, vector<32x128xf32>, vector<8x128xf32> -> vector<8x128xf32>
    %49 = arith.addf %47, %48 : vector<8x128xf32>
    %50 = arith.negf %49 : vector<8x128xf32>
    %51 = math.exp %50 : vector<8x128xf32>
    %cst_17 = arith.constant 1.000000e+00 : f32
    %52 = vector.broadcast %cst_17 : f32 to vector<8x128xf32>
    %53 = arith.addf %52, %51 : vector<8x128xf32>
    %54 = arith.divf %52, %53 : vector<8x128xf32>
    %55 = math.tanh %49 : vector<8x128xf32>
    %56 = vector.extract_strided_slice %54 {offsets = [0, 0], sizes = [8, 32], strides = [1, 1]} : vector<8x128xf32> to vector<8x32xf32>
    %57 = vector.extract_strided_slice %54 {offsets = [0, 32], sizes = [8, 32], strides = [1, 1]} : vector<8x128xf32> to vector<8x32xf32>
    %58 = vector.extract_strided_slice %55 {offsets = [0, 64], sizes = [8, 32], strides = [1, 1]} : vector<8x128xf32> to vector<8x32xf32>
    %59 = vector.extract_strided_slice %54 {offsets = [0, 96], sizes = [8, 32], strides = [1, 1]} : vector<8x128xf32> to vector<8x32xf32>
    %60 = arith.mulf %57, %43 : vector<8x32xf32>
    %61 = arith.mulf %56, %58 : vector<8x32xf32>
    %62 = arith.addf %60, %61 : vector<8x32xf32>
    %63 = math.tanh %62 : vector<8x32xf32>
    %64 = arith.mulf %59, %63 : vector<8x32xf32>
    %c16 = arith.constant 16 : index
    %c0_18 = arith.constant 0 : index
    %65 = vector.load %arg13[%c16, %c0_18] : memref<64x32xf32, #tpu.memory_space<vmem>>, vector<8x32xf32>
    tpu.vector_store %arg13[%c16, %c0_18], %64 {strides = array<i32>} : memref<64x32xf32, #tpu.memory_space<vmem>>, vector<8x32xf32>,
    %66 = vector.extract_strided_slice %6 {offsets = [24, 0], sizes = [8, 128], strides = [1, 1]} : vector<64x128xf32> to vector<8x128xf32>
    %cst_19 = arith.constant dense<0.000000e+00> : vector<8x128xf32>
    %67 = tpu.matmul %64, %2, %cst_19 {dimension_numbers = #tpu.dot_dimension_numbers<[1], [0], [0], [1], [0, 0, 1, 1], [], []>} : vector<8x32xf32>, vector<32x128xf32>, vector<8x128xf32> -> vector<8x128xf32>
    %68 = arith.addf %66, %67 : vector<8x128xf32>
    %69 = arith.negf %68 : vector<8x128xf32>
    %70 = math.exp %69 : vector<8x128xf32>
    %cst_20 = arith.constant 1.000000e+00 : f32
    %71 = vector.broadcast %cst_20 : f32 to vector<8x128xf32>
    %72 = arith.addf %71, %70 : vector<8x128xf32>
    %73 = arith.divf %71, %72 : vector<8x128xf32>
    %74 = math.tanh %68 : vector<8x128xf32>
    %75 = vector.extract_strided_slice %73 {offsets = [0, 0], sizes = [8, 32], strides = [1, 1]} : vector<8x128xf32> to vector<8x32xf32>
    %76 = vector.extract_strided_slice %73 {offsets = [0, 32], sizes = [8, 32], strides = [1, 1]} : vector<8x128xf32> to vector<8x32xf32>
    %77 = vector.extract_strided_slice %74 {offsets = [0, 64], sizes = [8, 32], strides = [1, 1]} : vector<8x128xf32> to vector<8x32xf32>
    %78 = vector.extract_strided_slice %73 {offsets = [0, 96], sizes = [8, 32], strides = [1, 1]} : vector<8x128xf32> to vector<8x32xf32>
    %79 = arith.mulf %76, %62 : vector<8x32xf32>
    %80 = arith.mulf %75, %77 : vector<8x32xf32>
    %81 = arith.addf %79, %80 : vector<8x32xf32>
    %82 = math.tanh %81 : vector<8x32xf32>
    %83 = arith.mulf %78, %82 : vector<8x32xf32>
    %c24 = arith.constant 24 : index
    %c0_21 = arith.constant 0 : index
    %84 = vector.load %arg13[%c24, %c0_21] : memref<64x32xf32, #tpu.memory_space<vmem>>, vector<8x32xf32>
    tpu.vector_store %arg13[%c24, %c0_21], %83 {strides = array<i32>} : memref<64x32xf32, #tpu.memory_space<vmem>>, vector<8x32xf32>,
    %85 = vector.extract_strided_slice %6 {offsets = [32, 0], sizes = [8, 128], strides = [1, 1]} : vector<64x128xf32> to vector<8x128xf32>
    %cst_22 = arith.constant dense<0.000000e+00> : vector<8x128xf32>
    %86 = tpu.matmul %83, %2, %cst_22 {dimension_numbers = #tpu.dot_dimension_numbers<[1], [0], [0], [1], [0, 0, 1, 1], [], []>} : vector<8x32xf32>, vector<32x128xf32>, vector<8x128xf32> -> vector<8x128xf32>
    %87 = arith.addf %85, %86 : vector<8x128xf32>
    %88 = arith.negf %87 : vector<8x128xf32>
    %89 = math.exp %88 : vector<8x128xf32>
    %cst_23 = arith.constant 1.000000e+00 : f32
    %90 = vector.broadcast %cst_23 : f32 to vector<8x128xf32>
    %91 = arith.addf %90, %89 : vector<8x128xf32>
    %92 = arith.divf %90, %91 : vector<8x128xf32>
    %93 = math.tanh %87 : vector<8x128xf32>
    %94 = vector.extract_strided_slice %92 {offsets = [0, 0], sizes = [8, 32], strides = [1, 1]} : vector<8x128xf32> to vector<8x32xf32>
    %95 = vector.extract_strided_slice %92 {offsets = [0, 32], sizes = [8, 32], strides = [1, 1]} : vector<8x128xf32> to vector<8x32xf32>
    %96 = vector.extract_strided_slice %93 {offsets = [0, 64], sizes = [8, 32], strides = [1, 1]} : vector<8x128xf32> to vector<8x32xf32>
    %97 = vector.extract_strided_slice %92 {offsets = [0, 96], sizes = [8, 32], strides = [1, 1]} : vector<8x128xf32> to vector<8x32xf32>
    %98 = arith.mulf %95, %81 : vector<8x32xf32>
    %99 = arith.mulf %94, %96 : vector<8x32xf32>
    %100 = arith.addf %98, %99 : vector<8x32xf32>
    %101 = math.tanh %100 : vector<8x32xf32>
    %102 = arith.mulf %97, %101 : vector<8x32xf32>
    %c32 = arith.constant 32 : index
    %c0_24 = arith.constant 0 : index
    %103 = vector.load %arg13[%c32, %c0_24] : memref<64x32xf32, #tpu.memory_space<vmem>>, vector<8x32xf32>
    tpu.vector_store %arg13[%c32, %c0_24], %102 {strides = array<i32>} : memref<64x32xf32, #tpu.memory_space<vmem>>, vector<8x32xf32>,
    %104 = vector.extract_strided_slice %6 {offsets = [40, 0], sizes = [8, 128], strides = [1, 1]} : vector<64x128xf32> to vector<8x128xf32>
    %cst_25 = arith.constant dense<0.000000e+00> : vector<8x128xf32>
    %105 = tpu.matmul %102, %2, %cst_25 {dimension_numbers = #tpu.dot_dimension_numbers<[1], [0], [0], [1], [0, 0, 1, 1], [], []>} : vector<8x32xf32>, vector<32x128xf32>, vector<8x128xf32> -> vector<8x128xf32>
    %106 = arith.addf %104, %105 : vector<8x128xf32>
    %107 = arith.negf %106 : vector<8x128xf32>
    %108 = math.exp %107 : vector<8x128xf32>
    %cst_26 = arith.constant 1.000000e+00 : f32
    %109 = vector.broadcast %cst_26 : f32 to vector<8x128xf32>
    %110 = arith.addf %109, %108 : vector<8x128xf32>
    %111 = arith.divf %109, %110 : vector<8x128xf32>
    %112 = math.tanh %106 : vector<8x128xf32>
    %113 = vector.extract_strided_slice %111 {offsets = [0, 0], sizes = [8, 32], strides = [1, 1]} : vector<8x128xf32> to vector<8x32xf32>
    %114 = vector.extract_strided_slice %111 {offsets = [0, 32], sizes = [8, 32], strides = [1, 1]} : vector<8x128xf32> to vector<8x32xf32>
    %115 = vector.extract_strided_slice %112 {offsets = [0, 64], sizes = [8, 32], strides = [1, 1]} : vector<8x128xf32> to vector<8x32xf32>
    %116 = vector.extract_strided_slice %111 {offsets = [0, 96], sizes = [8, 32], strides = [1, 1]} : vector<8x128xf32> to vector<8x32xf32>
    %117 = arith.mulf %114, %100 : vector<8x32xf32>
    %118 = arith.mulf %113, %115 : vector<8x32xf32>
    %119 = arith.addf %117, %118 : vector<8x32xf32>
    %120 = math.tanh %119 : vector<8x32xf32>
    %121 = arith.mulf %116, %120 : vector<8x32xf32>
    %c40 = arith.constant 40 : index
    %c0_27 = arith.constant 0 : index
    %122 = vector.load %arg13[%c40, %c0_27] : memref<64x32xf32, #tpu.memory_space<vmem>>, vector<8x32xf32>
    tpu.vector_store %arg13[%c40, %c0_27], %121 {strides = array<i32>} : memref<64x32xf32, #tpu.memory_space<vmem>>, vector<8x32xf32>,
    %123 = vector.extract_strided_slice %6 {offsets = [48, 0], sizes = [8, 128], strides = [1, 1]} : vector<64x128xf32> to vector<8x128xf32>
    %cst_28 = arith.constant dense<0.000000e+00> : vector<8x128xf32>
    %124 = tpu.matmul %121, %2, %cst_28 {dimension_numbers = #tpu.dot_dimension_numbers<[1], [0], [0], [1], [0, 0, 1, 1], [], []>} : vector<8x32xf32>, vector<32x128xf32>, vector<8x128xf32> -> vector<8x128xf32>
    %125 = arith.addf %123, %124 : vector<8x128xf32>
    %126 = arith.negf %125 : vector<8x128xf32>
    %127 = math.exp %126 : vector<8x128xf32>
    %cst_29 = arith.constant 1.000000e+00 : f32
    %128 = vector.broadcast %cst_29 : f32 to vector<8x128xf32>
    %129 = arith.addf %128, %127 : vector<8x128xf32>
    %130 = arith.divf %128, %129 : vector<8x128xf32>
    %131 = math.tanh %125 : vector<8x128xf32>
    %132 = vector.extract_strided_slice %130 {offsets = [0, 0], sizes = [8, 32], strides = [1, 1]} : vector<8x128xf32> to vector<8x32xf32>
    %133 = vector.extract_strided_slice %130 {offsets = [0, 32], sizes = [8, 32], strides = [1, 1]} : vector<8x128xf32> to vector<8x32xf32>
    %134 = vector.extract_strided_slice %131 {offsets = [0, 64], sizes = [8, 32], strides = [1, 1]} : vector<8x128xf32> to vector<8x32xf32>
    %135 = vector.extract_strided_slice %130 {offsets = [0, 96], sizes = [8, 32], strides = [1, 1]} : vector<8x128xf32> to vector<8x32xf32>
    %136 = arith.mulf %133, %119 : vector<8x32xf32>
    %137 = arith.mulf %132, %134 : vector<8x32xf32>
    %138 = arith.addf %136, %137 : vector<8x32xf32>
    %139 = math.tanh %138 : vector<8x32xf32>
    %140 = arith.mulf %135, %139 : vector<8x32xf32>
    %c48 = arith.constant 48 : index
    %c0_30 = arith.constant 0 : index
    %141 = vector.load %arg13[%c48, %c0_30] : memref<64x32xf32, #tpu.memory_space<vmem>>, vector<8x32xf32>
    tpu.vector_store %arg13[%c48, %c0_30], %140 {strides = array<i32>} : memref<64x32xf32, #tpu.memory_space<vmem>>, vector<8x32xf32>,
    %142 = vector.extract_strided_slice %6 {offsets = [56, 0], sizes = [8, 128], strides = [1, 1]} : vector<64x128xf32> to vector<8x128xf32>
    %cst_31 = arith.constant dense<0.000000e+00> : vector<8x128xf32>
    %143 = tpu.matmul %140, %2, %cst_31 {dimension_numbers = #tpu.dot_dimension_numbers<[1], [0], [0], [1], [0, 0, 1, 1], [], []>} : vector<8x32xf32>, vector<32x128xf32>, vector<8x128xf32> -> vector<8x128xf32>
    %144 = arith.addf %142, %143 : vector<8x128xf32>
    %145 = arith.negf %144 : vector<8x128xf32>
    %146 = math.exp %145 : vector<8x128xf32>
    %cst_32 = arith.constant 1.000000e+00 : f32
    %147 = vector.broadcast %cst_32 : f32 to vector<8x128xf32>
    %148 = arith.addf %147, %146 : vector<8x128xf32>
    %149 = arith.divf %147, %148 : vector<8x128xf32>
    %150 = math.tanh %144 : vector<8x128xf32>
    %151 = vector.extract_strided_slice %149 {offsets = [0, 0], sizes = [8, 32], strides = [1, 1]} : vector<8x128xf32> to vector<8x32xf32>
    %152 = vector.extract_strided_slice %149 {offsets = [0, 32], sizes = [8, 32], strides = [1, 1]} : vector<8x128xf32> to vector<8x32xf32>
    %153 = vector.extract_strided_slice %150 {offsets = [0, 64], sizes = [8, 32], strides = [1, 1]} : vector<8x128xf32> to vector<8x32xf32>
    %154 = vector.extract_strided_slice %149 {offsets = [0, 96], sizes = [8, 32], strides = [1, 1]} : vector<8x128xf32> to vector<8x32xf32>
    %155 = arith.mulf %152, %138 : vector<8x32xf32>
    %156 = arith.mulf %151, %153 : vector<8x32xf32>
    %157 = arith.addf %155, %156 : vector<8x32xf32>
    %158 = math.tanh %157 : vector<8x32xf32>
    %159 = arith.mulf %154, %158 : vector<8x32xf32>
    %c56 = arith.constant 56 : index
    %c0_33 = arith.constant 0 : index
    %160 = vector.load %arg13[%c56, %c0_33] : memref<64x32xf32, #tpu.memory_space<vmem>>, vector<8x32xf32>
    tpu.vector_store %arg13[%c56, %c0_33], %159 {strides = array<i32>} : memref<64x32xf32, #tpu.memory_space<vmem>>, vector<8x32xf32>,
    %c0_34 = arith.constant 0 : index
    %c0_35 = arith.constant 0 : index
    %161 = vector.load %arg13[%c0_34, %c0_35] : memref<64x32xf32, #tpu.memory_space<vmem>>, vector<64x32xf32>
    %c0_36 = arith.constant 0 : index
    %c0_37 = arith.constant 0 : index
    %162 = vector.load %arg4[%c0_36, %c0_37] : memref<32x128xf32, #tpu.memory_space<vmem>>, vector<32x128xf32>
    %c0_38 = arith.constant 0 : index
    %c0_39 = arith.constant 0 : index
    %163 = vector.load %arg5[%c0_38, %c0_39] : memref<32x128xf32, #tpu.memory_space<vmem>>, vector<32x128xf32>
    %cst_40 = arith.constant dense<0.000000e+00> : vector<64x128xf32>
    %164 = tpu.matmul %161, %162, %cst_40 {dimension_numbers = #tpu.dot_dimension_numbers<[1], [0], [0], [1], [0, 0, 1, 1], [], []>} : vector<64x32xf32>, vector<32x128xf32>, vector<64x128xf32> -> vector<64x128xf32>
    %c0_41 = arith.constant 0 : index
    %c0_42 = arith.constant 0 : index
    %165 = vector.load %arg6[%c0_41, %c0_42] : memref<1x128xf32, #tpu.memory_space<vmem>>, vector<1x128xf32>
    %166 = vector.broadcast %165 : vector<1x128xf32> to vector<64x128xf32>
    %167 = arith.addf %164, %166 : vector<64x128xf32>
    %cst_43 = arith.constant 0.000000e+00 : f32
    %168 = vector.broadcast %cst_43 : f32 to vector<8x32xf32>
    %cst_44 = arith.constant 0.000000e+00 : f32
    %169 = vector.broadcast %cst_44 : f32 to vector<8x32xf32>
    %170 = vector.extract_strided_slice %167 {offsets = [0, 0], sizes = [8, 128], strides = [1, 1]} : vector<64x128xf32> to vector<8x128xf32>
    %cst_45 = arith.constant dense<0.000000e+00> : vector<8x128xf32>
    %171 = tpu.matmul %168, %163, %cst_45 {dimension_numbers = #tpu.dot_dimension_numbers<[1], [0], [0], [1], [0, 0, 1, 1], [], []>} : vector<8x32xf32>, vector<32x128xf32>, vector<8x128xf32> -> vector<8x128xf32>
    %172 = arith.addf %170, %171 : vector<8x128xf32>
    %173 = arith.negf %172 : vector<8x128xf32>
    %174 = math.exp %173 : vector<8x128xf32>
    %cst_46 = arith.constant 1.000000e+00 : f32
    %175 = vector.broadcast %cst_46 : f32 to vector<8x128xf32>
    %176 = arith.addf %175, %174 : vector<8x128xf32>
    %177 = arith.divf %175, %176 : vector<8x128xf32>
    %178 = math.tanh %172 : vector<8x128xf32>
    %179 = vector.extract_strided_slice %177 {offsets = [0, 0], sizes = [8, 32], strides = [1, 1]} : vector<8x128xf32> to vector<8x32xf32>
    %180 = vector.extract_strided_slice %177 {offsets = [0, 32], sizes = [8, 32], strides = [1, 1]} : vector<8x128xf32> to vector<8x32xf32>
    %181 = vector.extract_strided_slice %178 {offsets = [0, 64], sizes = [8, 32], strides = [1, 1]} : vector<8x128xf32> to vector<8x32xf32>
    %182 = vector.extract_strided_slice %177 {offsets = [0, 96], sizes = [8, 32], strides = [1, 1]} : vector<8x128xf32> to vector<8x32xf32>
    %183 = arith.mulf %180, %169 : vector<8x32xf32>
    %184 = arith.mulf %179, %181 : vector<8x32xf32>
    %185 = arith.addf %183, %184 : vector<8x32xf32>
    %186 = math.tanh %185 : vector<8x32xf32>
    %187 = arith.mulf %182, %186 : vector<8x32xf32>
    %c0_47 = arith.constant 0 : index
    %c0_48 = arith.constant 0 : index
    %188 = vector.load %arg13[%c0_47, %c0_48] : memref<64x32xf32, #tpu.memory_space<vmem>>, vector<8x32xf32>
    tpu.vector_store %arg13[%c0_47, %c0_48], %187 {strides = array<i32>} : memref<64x32xf32, #tpu.memory_space<vmem>>, vector<8x32xf32>,
    %189 = vector.extract_strided_slice %167 {offsets = [8, 0], sizes = [8, 128], strides = [1, 1]} : vector<64x128xf32> to vector<8x128xf32>
    %cst_49 = arith.constant dense<0.000000e+00> : vector<8x128xf32>
    %190 = tpu.matmul %187, %163, %cst_49 {dimension_numbers = #tpu.dot_dimension_numbers<[1], [0], [0], [1], [0, 0, 1, 1], [], []>} : vector<8x32xf32>, vector<32x128xf32>, vector<8x128xf32> -> vector<8x128xf32>
    %191 = arith.addf %189, %190 : vector<8x128xf32>
    %192 = arith.negf %191 : vector<8x128xf32>
    %193 = math.exp %192 : vector<8x128xf32>
    %cst_50 = arith.constant 1.000000e+00 : f32
    %194 = vector.broadcast %cst_50 : f32 to vector<8x128xf32>
    %195 = arith.addf %194, %193 : vector<8x128xf32>
    %196 = arith.divf %194, %195 : vector<8x128xf32>
    %197 = math.tanh %191 : vector<8x128xf32>
    %198 = vector.extract_strided_slice %196 {offsets = [0, 0], sizes = [8, 32], strides = [1, 1]} : vector<8x128xf32> to vector<8x32xf32>
    %199 = vector.extract_strided_slice %196 {offsets = [0, 32], sizes = [8, 32], strides = [1, 1]} : vector<8x128xf32> to vector<8x32xf32>
    %200 = vector.extract_strided_slice %197 {offsets = [0, 64], sizes = [8, 32], strides = [1, 1]} : vector<8x128xf32> to vector<8x32xf32>
    %201 = vector.extract_strided_slice %196 {offsets = [0, 96], sizes = [8, 32], strides = [1, 1]} : vector<8x128xf32> to vector<8x32xf32>
    %202 = arith.mulf %199, %185 : vector<8x32xf32>
    %203 = arith.mulf %198, %200 : vector<8x32xf32>
    %204 = arith.addf %202, %203 : vector<8x32xf32>
    %205 = math.tanh %204 : vector<8x32xf32>
    %206 = arith.mulf %201, %205 : vector<8x32xf32>
    %c8_51 = arith.constant 8 : index
    %c0_52 = arith.constant 0 : index
    %207 = vector.load %arg13[%c8_51, %c0_52] : memref<64x32xf32, #tpu.memory_space<vmem>>, vector<8x32xf32>
    tpu.vector_store %arg13[%c8_51, %c0_52], %206 {strides = array<i32>} : memref<64x32xf32, #tpu.memory_space<vmem>>, vector<8x32xf32>,
    %208 = vector.extract_strided_slice %167 {offsets = [16, 0], sizes = [8, 128], strides = [1, 1]} : vector<64x128xf32> to vector<8x128xf32>
    %cst_53 = arith.constant dense<0.000000e+00> : vector<8x128xf32>
    %209 = tpu.matmul %206, %163, %cst_53 {dimension_numbers = #tpu.dot_dimension_numbers<[1], [0], [0], [1], [0, 0, 1, 1], [], []>} : vector<8x32xf32>, vector<32x128xf32>, vector<8x128xf32> -> vector<8x128xf32>
    %210 = arith.addf %208, %209 : vector<8x128xf32>
    %211 = arith.negf %210 : vector<8x128xf32>
    %212 = math.exp %211 : vector<8x128xf32>
    %cst_54 = arith.constant 1.000000e+00 : f32
    %213 = vector.broadcast %cst_54 : f32 to vector<8x128xf32>
    %214 = arith.addf %213, %212 : vector<8x128xf32>
    %215 = arith.divf %213, %214 : vector<8x128xf32>
    %216 = math.tanh %210 : vector<8x128xf32>
    %217 = vector.extract_strided_slice %215 {offsets = [0, 0], sizes = [8, 32], strides = [1, 1]} : vector<8x128xf32> to vector<8x32xf32>
    %218 = vector.extract_strided_slice %215 {offsets = [0, 32], sizes = [8, 32], strides = [1, 1]} : vector<8x128xf32> to vector<8x32xf32>
    %219 = vector.extract_strided_slice %216 {offsets = [0, 64], sizes = [8, 32], strides = [1, 1]} : vector<8x128xf32> to vector<8x32xf32>
    %220 = vector.extract_strided_slice %215 {offsets = [0, 96], sizes = [8, 32], strides = [1, 1]} : vector<8x128xf32> to vector<8x32xf32>
    %221 = arith.mulf %218, %204 : vector<8x32xf32>
    %222 = arith.mulf %217, %219 : vector<8x32xf32>
    %223 = arith.addf %221, %222 : vector<8x32xf32>
    %224 = math.tanh %223 : vector<8x32xf32>
    %225 = arith.mulf %220, %224 : vector<8x32xf32>
    %c16_55 = arith.constant 16 : index
    %c0_56 = arith.constant 0 : index
    %226 = vector.load %arg13[%c16_55, %c0_56] : memref<64x32xf32, #tpu.memory_space<vmem>>, vector<8x32xf32>
    tpu.vector_store %arg13[%c16_55, %c0_56], %225 {strides = array<i32>} : memref<64x32xf32, #tpu.memory_space<vmem>>, vector<8x32xf32>,
    %227 = vector.extract_strided_slice %167 {offsets = [24, 0], sizes = [8, 128], strides = [1, 1]} : vector<64x128xf32> to vector<8x128xf32>
    %cst_57 = arith.constant dense<0.000000e+00> : vector<8x128xf32>
    %228 = tpu.matmul %225, %163, %cst_57 {dimension_numbers = #tpu.dot_dimension_numbers<[1], [0], [0], [1], [0, 0, 1, 1], [], []>} : vector<8x32xf32>, vector<32x128xf32>, vector<8x128xf32> -> vector<8x128xf32>
    %229 = arith.addf %227, %228 : vector<8x128xf32>
    %230 = arith.negf %229 : vector<8x128xf32>
    %231 = math.exp %230 : vector<8x128xf32>
    %cst_58 = arith.constant 1.000000e+00 : f32
    %232 = vector.broadcast %cst_58 : f32 to vector<8x128xf32>
    %233 = arith.addf %232, %231 : vector<8x128xf32>
    %234 = arith.divf %232, %233 : vector<8x128xf32>
    %235 = math.tanh %229 : vector<8x128xf32>
    %236 = vector.extract_strided_slice %234 {offsets = [0, 0], sizes = [8, 32], strides = [1, 1]} : vector<8x128xf32> to vector<8x32xf32>
    %237 = vector.extract_strided_slice %234 {offsets = [0, 32], sizes = [8, 32], strides = [1, 1]} : vector<8x128xf32> to vector<8x32xf32>
    %238 = vector.extract_strided_slice %235 {offsets = [0, 64], sizes = [8, 32], strides = [1, 1]} : vector<8x128xf32> to vector<8x32xf32>
    %239 = vector.extract_strided_slice %234 {offsets = [0, 96], sizes = [8, 32], strides = [1, 1]} : vector<8x128xf32> to vector<8x32xf32>
    %240 = arith.mulf %237, %223 : vector<8x32xf32>
    %241 = arith.mulf %236, %238 : vector<8x32xf32>
    %242 = arith.addf %240, %241 : vector<8x32xf32>
    %243 = math.tanh %242 : vector<8x32xf32>
    %244 = arith.mulf %239, %243 : vector<8x32xf32>
    %c24_59 = arith.constant 24 : index
    %c0_60 = arith.constant 0 : index
    %245 = vector.load %arg13[%c24_59, %c0_60] : memref<64x32xf32, #tpu.memory_space<vmem>>, vector<8x32xf32>
    tpu.vector_store %arg13[%c24_59, %c0_60], %244 {strides = array<i32>} : memref<64x32xf32, #tpu.memory_space<vmem>>, vector<8x32xf32>,
    %246 = vector.extract_strided_slice %167 {offsets = [32, 0], sizes = [8, 128], strides = [1, 1]} : vector<64x128xf32> to vector<8x128xf32>
    %cst_61 = arith.constant dense<0.000000e+00> : vector<8x128xf32>
    %247 = tpu.matmul %244, %163, %cst_61 {dimension_numbers = #tpu.dot_dimension_numbers<[1], [0], [0], [1], [0, 0, 1, 1], [], []>} : vector<8x32xf32>, vector<32x128xf32>, vector<8x128xf32> -> vector<8x128xf32>
    %248 = arith.addf %246, %247 : vector<8x128xf32>
    %249 = arith.negf %248 : vector<8x128xf32>
    %250 = math.exp %249 : vector<8x128xf32>
    %cst_62 = arith.constant 1.000000e+00 : f32
    %251 = vector.broadcast %cst_62 : f32 to vector<8x128xf32>
    %252 = arith.addf %251, %250 : vector<8x128xf32>
    %253 = arith.divf %251, %252 : vector<8x128xf32>
    %254 = math.tanh %248 : vector<8x128xf32>
    %255 = vector.extract_strided_slice %253 {offsets = [0, 0], sizes = [8, 32], strides = [1, 1]} : vector<8x128xf32> to vector<8x32xf32>
    %256 = vector.extract_strided_slice %253 {offsets = [0, 32], sizes = [8, 32], strides = [1, 1]} : vector<8x128xf32> to vector<8x32xf32>
    %257 = vector.extract_strided_slice %254 {offsets = [0, 64], sizes = [8, 32], strides = [1, 1]} : vector<8x128xf32> to vector<8x32xf32>
    %258 = vector.extract_strided_slice %253 {offsets = [0, 96], sizes = [8, 32], strides = [1, 1]} : vector<8x128xf32> to vector<8x32xf32>
    %259 = arith.mulf %256, %242 : vector<8x32xf32>
    %260 = arith.mulf %255, %257 : vector<8x32xf32>
    %261 = arith.addf %259, %260 : vector<8x32xf32>
    %262 = math.tanh %261 : vector<8x32xf32>
    %263 = arith.mulf %258, %262 : vector<8x32xf32>
    %c32_63 = arith.constant 32 : index
    %c0_64 = arith.constant 0 : index
    %264 = vector.load %arg13[%c32_63, %c0_64] : memref<64x32xf32, #tpu.memory_space<vmem>>, vector<8x32xf32>
    tpu.vector_store %arg13[%c32_63, %c0_64], %263 {strides = array<i32>} : memref<64x32xf32, #tpu.memory_space<vmem>>, vector<8x32xf32>,
    %265 = vector.extract_strided_slice %167 {offsets = [40, 0], sizes = [8, 128], strides = [1, 1]} : vector<64x128xf32> to vector<8x128xf32>
    %cst_65 = arith.constant dense<0.000000e+00> : vector<8x128xf32>
    %266 = tpu.matmul %263, %163, %cst_65 {dimension_numbers = #tpu.dot_dimension_numbers<[1], [0], [0], [1], [0, 0, 1, 1], [], []>} : vector<8x32xf32>, vector<32x128xf32>, vector<8x128xf32> -> vector<8x128xf32>
    %267 = arith.addf %265, %266 : vector<8x128xf32>
    %268 = arith.negf %267 : vector<8x128xf32>
    %269 = math.exp %268 : vector<8x128xf32>
    %cst_66 = arith.constant 1.000000e+00 : f32
    %270 = vector.broadcast %cst_66 : f32 to vector<8x128xf32>
    %271 = arith.addf %270, %269 : vector<8x128xf32>
    %272 = arith.divf %270, %271 : vector<8x128xf32>
    %273 = math.tanh %267 : vector<8x128xf32>
    %274 = vector.extract_strided_slice %272 {offsets = [0, 0], sizes = [8, 32], strides = [1, 1]} : vector<8x128xf32> to vector<8x32xf32>
    %275 = vector.extract_strided_slice %272 {offsets = [0, 32], sizes = [8, 32], strides = [1, 1]} : vector<8x128xf32> to vector<8x32xf32>
    %276 = vector.extract_strided_slice %273 {offsets = [0, 64], sizes = [8, 32], strides = [1, 1]} : vector<8x128xf32> to vector<8x32xf32>
    %277 = vector.extract_strided_slice %272 {offsets = [0, 96], sizes = [8, 32], strides = [1, 1]} : vector<8x128xf32> to vector<8x32xf32>
    %278 = arith.mulf %275, %261 : vector<8x32xf32>
    %279 = arith.mulf %274, %276 : vector<8x32xf32>
    %280 = arith.addf %278, %279 : vector<8x32xf32>
    %281 = math.tanh %280 : vector<8x32xf32>
    %282 = arith.mulf %277, %281 : vector<8x32xf32>
    %c40_67 = arith.constant 40 : index
    %c0_68 = arith.constant 0 : index
    %283 = vector.load %arg13[%c40_67, %c0_68] : memref<64x32xf32, #tpu.memory_space<vmem>>, vector<8x32xf32>
    tpu.vector_store %arg13[%c40_67, %c0_68], %282 {strides = array<i32>} : memref<64x32xf32, #tpu.memory_space<vmem>>, vector<8x32xf32>,
    %284 = vector.extract_strided_slice %167 {offsets = [48, 0], sizes = [8, 128], strides = [1, 1]} : vector<64x128xf32> to vector<8x128xf32>
    %cst_69 = arith.constant dense<0.000000e+00> : vector<8x128xf32>
    %285 = tpu.matmul %282, %163, %cst_69 {dimension_numbers = #tpu.dot_dimension_numbers<[1], [0], [0], [1], [0, 0, 1, 1], [], []>} : vector<8x32xf32>, vector<32x128xf32>, vector<8x128xf32> -> vector<8x128xf32>
    %286 = arith.addf %284, %285 : vector<8x128xf32>
    %287 = arith.negf %286 : vector<8x128xf32>
    %288 = math.exp %287 : vector<8x128xf32>
    %cst_70 = arith.constant 1.000000e+00 : f32
    %289 = vector.broadcast %cst_70 : f32 to vector<8x128xf32>
    %290 = arith.addf %289, %288 : vector<8x128xf32>
    %291 = arith.divf %289, %290 : vector<8x128xf32>
    %292 = math.tanh %286 : vector<8x128xf32>
    %293 = vector.extract_strided_slice %291 {offsets = [0, 0], sizes = [8, 32], strides = [1, 1]} : vector<8x128xf32> to vector<8x32xf32>
    %294 = vector.extract_strided_slice %291 {offsets = [0, 32], sizes = [8, 32], strides = [1, 1]} : vector<8x128xf32> to vector<8x32xf32>
    %295 = vector.extract_strided_slice %292 {offsets = [0, 64], sizes = [8, 32], strides = [1, 1]} : vector<8x128xf32> to vector<8x32xf32>
    %296 = vector.extract_strided_slice %291 {offsets = [0, 96], sizes = [8, 32], strides = [1, 1]} : vector<8x128xf32> to vector<8x32xf32>
    %297 = arith.mulf %294, %280 : vector<8x32xf32>
    %298 = arith.mulf %293, %295 : vector<8x32xf32>
    %299 = arith.addf %297, %298 : vector<8x32xf32>
    %300 = math.tanh %299 : vector<8x32xf32>
    %301 = arith.mulf %296, %300 : vector<8x32xf32>
    %c48_71 = arith.constant 48 : index
    %c0_72 = arith.constant 0 : index
    %302 = vector.load %arg13[%c48_71, %c0_72] : memref<64x32xf32, #tpu.memory_space<vmem>>, vector<8x32xf32>
    tpu.vector_store %arg13[%c48_71, %c0_72], %301 {strides = array<i32>} : memref<64x32xf32, #tpu.memory_space<vmem>>, vector<8x32xf32>,
    %303 = vector.extract_strided_slice %167 {offsets = [56, 0], sizes = [8, 128], strides = [1, 1]} : vector<64x128xf32> to vector<8x128xf32>
    %cst_73 = arith.constant dense<0.000000e+00> : vector<8x128xf32>
    %304 = tpu.matmul %301, %163, %cst_73 {dimension_numbers = #tpu.dot_dimension_numbers<[1], [0], [0], [1], [0, 0, 1, 1], [], []>} : vector<8x32xf32>, vector<32x128xf32>, vector<8x128xf32> -> vector<8x128xf32>
    %305 = arith.addf %303, %304 : vector<8x128xf32>
    %306 = arith.negf %305 : vector<8x128xf32>
    %307 = math.exp %306 : vector<8x128xf32>
    %cst_74 = arith.constant 1.000000e+00 : f32
    %308 = vector.broadcast %cst_74 : f32 to vector<8x128xf32>
    %309 = arith.addf %308, %307 : vector<8x128xf32>
    %310 = arith.divf %308, %309 : vector<8x128xf32>
    %311 = math.tanh %305 : vector<8x128xf32>
    %312 = vector.extract_strided_slice %310 {offsets = [0, 0], sizes = [8, 32], strides = [1, 1]} : vector<8x128xf32> to vector<8x32xf32>
    %313 = vector.extract_strided_slice %310 {offsets = [0, 32], sizes = [8, 32], strides = [1, 1]} : vector<8x128xf32> to vector<8x32xf32>
    %314 = vector.extract_strided_slice %311 {offsets = [0, 64], sizes = [8, 32], strides = [1, 1]} : vector<8x128xf32> to vector<8x32xf32>
    %315 = vector.extract_strided_slice %310 {offsets = [0, 96], sizes = [8, 32], strides = [1, 1]} : vector<8x128xf32> to vector<8x32xf32>
    %316 = arith.mulf %313, %299 : vector<8x32xf32>
    %317 = arith.mulf %312, %314 : vector<8x32xf32>
    %318 = arith.addf %316, %317 : vector<8x32xf32>
    %319 = math.tanh %318 : vector<8x32xf32>
    %320 = arith.mulf %315, %319 : vector<8x32xf32>
    %c56_75 = arith.constant 56 : index
    %c0_76 = arith.constant 0 : index
    %321 = vector.load %arg13[%c56_75, %c0_76] : memref<64x32xf32, #tpu.memory_space<vmem>>, vector<8x32xf32>
    tpu.vector_store %arg13[%c56_75, %c0_76], %320 {strides = array<i32>} : memref<64x32xf32, #tpu.memory_space<vmem>>, vector<8x32xf32>,
    %c0_77 = arith.constant 0 : index
    %c0_78 = arith.constant 0 : index
    %322 = vector.load %arg13[%c0_77, %c0_78] : memref<64x32xf32, #tpu.memory_space<vmem>>, vector<64x32xf32>
    %c0_79 = arith.constant 0 : index
    %c0_80 = arith.constant 0 : index
    %323 = vector.load %arg7[%c0_79, %c0_80] : memref<32x128xf32, #tpu.memory_space<vmem>>, vector<32x128xf32>
    %c0_81 = arith.constant 0 : index
    %c0_82 = arith.constant 0 : index
    %324 = vector.load %arg8[%c0_81, %c0_82] : memref<32x128xf32, #tpu.memory_space<vmem>>, vector<32x128xf32>
    %cst_83 = arith.constant dense<0.000000e+00> : vector<64x128xf32>
    %325 = tpu.matmul %322, %323, %cst_83 {dimension_numbers = #tpu.dot_dimension_numbers<[1], [0], [0], [1], [0, 0, 1, 1], [], []>} : vector<64x32xf32>, vector<32x128xf32>, vector<64x128xf32> -> vector<64x128xf32>
    %c0_84 = arith.constant 0 : index
    %c0_85 = arith.constant 0 : index
    %326 = vector.load %arg9[%c0_84, %c0_85] : memref<1x128xf32, #tpu.memory_space<vmem>>, vector<1x128xf32>
    %327 = vector.broadcast %326 : vector<1x128xf32> to vector<64x128xf32>
    %328 = arith.addf %325, %327 : vector<64x128xf32>
    %cst_86 = arith.constant 0.000000e+00 : f32
    %329 = vector.broadcast %cst_86 : f32 to vector<8x32xf32>
    %cst_87 = arith.constant 0.000000e+00 : f32
    %330 = vector.broadcast %cst_87 : f32 to vector<8x32xf32>
    %331 = vector.extract_strided_slice %328 {offsets = [0, 0], sizes = [8, 128], strides = [1, 1]} : vector<64x128xf32> to vector<8x128xf32>
    %cst_88 = arith.constant dense<0.000000e+00> : vector<8x128xf32>
    %332 = tpu.matmul %329, %324, %cst_88 {dimension_numbers = #tpu.dot_dimension_numbers<[1], [0], [0], [1], [0, 0, 1, 1], [], []>} : vector<8x32xf32>, vector<32x128xf32>, vector<8x128xf32> -> vector<8x128xf32>
    %333 = arith.addf %331, %332 : vector<8x128xf32>
    %334 = arith.negf %333 : vector<8x128xf32>
    %335 = math.exp %334 : vector<8x128xf32>
    %cst_89 = arith.constant 1.000000e+00 : f32
    %336 = vector.broadcast %cst_89 : f32 to vector<8x128xf32>
    %337 = arith.addf %336, %335 : vector<8x128xf32>
    %338 = arith.divf %336, %337 : vector<8x128xf32>
    %339 = math.tanh %333 : vector<8x128xf32>
    %340 = vector.extract_strided_slice %338 {offsets = [0, 0], sizes = [8, 32], strides = [1, 1]} : vector<8x128xf32> to vector<8x32xf32>
    %341 = vector.extract_strided_slice %338 {offsets = [0, 32], sizes = [8, 32], strides = [1, 1]} : vector<8x128xf32> to vector<8x32xf32>
    %342 = vector.extract_strided_slice %339 {offsets = [0, 64], sizes = [8, 32], strides = [1, 1]} : vector<8x128xf32> to vector<8x32xf32>
    %343 = vector.extract_strided_slice %338 {offsets = [0, 96], sizes = [8, 32], strides = [1, 1]} : vector<8x128xf32> to vector<8x32xf32>
    %344 = arith.mulf %341, %330 : vector<8x32xf32>
    %345 = arith.mulf %340, %342 : vector<8x32xf32>
    %346 = arith.addf %344, %345 : vector<8x32xf32>
    %347 = math.tanh %346 : vector<8x32xf32>
    %348 = arith.mulf %343, %347 : vector<8x32xf32>
    %c0_90 = arith.constant 0 : index
    %c0_91 = arith.constant 0 : index
    %349 = vector.load %arg13[%c0_90, %c0_91] : memref<64x32xf32, #tpu.memory_space<vmem>>, vector<8x32xf32>
    tpu.vector_store %arg13[%c0_90, %c0_91], %348 {strides = array<i32>} : memref<64x32xf32, #tpu.memory_space<vmem>>, vector<8x32xf32>,
    %350 = vector.extract_strided_slice %328 {offsets = [8, 0], sizes = [8, 128], strides = [1, 1]} : vector<64x128xf32> to vector<8x128xf32>
    %cst_92 = arith.constant dense<0.000000e+00> : vector<8x128xf32>
    %351 = tpu.matmul %348, %324, %cst_92 {dimension_numbers = #tpu.dot_dimension_numbers<[1], [0], [0], [1], [0, 0, 1, 1], [], []>} : vector<8x32xf32>, vector<32x128xf32>, vector<8x128xf32> -> vector<8x128xf32>
    %352 = arith.addf %350, %351 : vector<8x128xf32>
    %353 = arith.negf %352 : vector<8x128xf32>
    %354 = math.exp %353 : vector<8x128xf32>
    %cst_93 = arith.constant 1.000000e+00 : f32
    %355 = vector.broadcast %cst_93 : f32 to vector<8x128xf32>
    %356 = arith.addf %355, %354 : vector<8x128xf32>
    %357 = arith.divf %355, %356 : vector<8x128xf32>
    %358 = math.tanh %352 : vector<8x128xf32>
    %359 = vector.extract_strided_slice %357 {offsets = [0, 0], sizes = [8, 32], strides = [1, 1]} : vector<8x128xf32> to vector<8x32xf32>
    %360 = vector.extract_strided_slice %357 {offsets = [0, 32], sizes = [8, 32], strides = [1, 1]} : vector<8x128xf32> to vector<8x32xf32>
    %361 = vector.extract_strided_slice %358 {offsets = [0, 64], sizes = [8, 32], strides = [1, 1]} : vector<8x128xf32> to vector<8x32xf32>
    %362 = vector.extract_strided_slice %357 {offsets = [0, 96], sizes = [8, 32], strides = [1, 1]} : vector<8x128xf32> to vector<8x32xf32>
    %363 = arith.mulf %360, %346 : vector<8x32xf32>
    %364 = arith.mulf %359, %361 : vector<8x32xf32>
    %365 = arith.addf %363, %364 : vector<8x32xf32>
    %366 = math.tanh %365 : vector<8x32xf32>
    %367 = arith.mulf %362, %366 : vector<8x32xf32>
    %c8_94 = arith.constant 8 : index
    %c0_95 = arith.constant 0 : index
    %368 = vector.load %arg13[%c8_94, %c0_95] : memref<64x32xf32, #tpu.memory_space<vmem>>, vector<8x32xf32>
    tpu.vector_store %arg13[%c8_94, %c0_95], %367 {strides = array<i32>} : memref<64x32xf32, #tpu.memory_space<vmem>>, vector<8x32xf32>,
    %369 = vector.extract_strided_slice %328 {offsets = [16, 0], sizes = [8, 128], strides = [1, 1]} : vector<64x128xf32> to vector<8x128xf32>
    %cst_96 = arith.constant dense<0.000000e+00> : vector<8x128xf32>
    %370 = tpu.matmul %367, %324, %cst_96 {dimension_numbers = #tpu.dot_dimension_numbers<[1], [0], [0], [1], [0, 0, 1, 1], [], []>} : vector<8x32xf32>, vector<32x128xf32>, vector<8x128xf32> -> vector<8x128xf32>
    %371 = arith.addf %369, %370 : vector<8x128xf32>
    %372 = arith.negf %371 : vector<8x128xf32>
    %373 = math.exp %372 : vector<8x128xf32>
    %cst_97 = arith.constant 1.000000e+00 : f32
    %374 = vector.broadcast %cst_97 : f32 to vector<8x128xf32>
    %375 = arith.addf %374, %373 : vector<8x128xf32>
    %376 = arith.divf %374, %375 : vector<8x128xf32>
    %377 = math.tanh %371 : vector<8x128xf32>
    %378 = vector.extract_strided_slice %376 {offsets = [0, 0], sizes = [8, 32], strides = [1, 1]} : vector<8x128xf32> to vector<8x32xf32>
    %379 = vector.extract_strided_slice %376 {offsets = [0, 32], sizes = [8, 32], strides = [1, 1]} : vector<8x128xf32> to vector<8x32xf32>
    %380 = vector.extract_strided_slice %377 {offsets = [0, 64], sizes = [8, 32], strides = [1, 1]} : vector<8x128xf32> to vector<8x32xf32>
    %381 = vector.extract_strided_slice %376 {offsets = [0, 96], sizes = [8, 32], strides = [1, 1]} : vector<8x128xf32> to vector<8x32xf32>
    %382 = arith.mulf %379, %365 : vector<8x32xf32>
    %383 = arith.mulf %378, %380 : vector<8x32xf32>
    %384 = arith.addf %382, %383 : vector<8x32xf32>
    %385 = math.tanh %384 : vector<8x32xf32>
    %386 = arith.mulf %381, %385 : vector<8x32xf32>
    %c16_98 = arith.constant 16 : index
    %c0_99 = arith.constant 0 : index
    %387 = vector.load %arg13[%c16_98, %c0_99] : memref<64x32xf32, #tpu.memory_space<vmem>>, vector<8x32xf32>
    tpu.vector_store %arg13[%c16_98, %c0_99], %386 {strides = array<i32>} : memref<64x32xf32, #tpu.memory_space<vmem>>, vector<8x32xf32>,
    %388 = vector.extract_strided_slice %328 {offsets = [24, 0], sizes = [8, 128], strides = [1, 1]} : vector<64x128xf32> to vector<8x128xf32>
    %cst_100 = arith.constant dense<0.000000e+00> : vector<8x128xf32>
    %389 = tpu.matmul %386, %324, %cst_100 {dimension_numbers = #tpu.dot_dimension_numbers<[1], [0], [0], [1], [0, 0, 1, 1], [], []>} : vector<8x32xf32>, vector<32x128xf32>, vector<8x128xf32> -> vector<8x128xf32>
    %390 = arith.addf %388, %389 : vector<8x128xf32>
    %391 = arith.negf %390 : vector<8x128xf32>
    %392 = math.exp %391 : vector<8x128xf32>
    %cst_101 = arith.constant 1.000000e+00 : f32
    %393 = vector.broadcast %cst_101 : f32 to vector<8x128xf32>
    %394 = arith.addf %393, %392 : vector<8x128xf32>
    %395 = arith.divf %393, %394 : vector<8x128xf32>
    %396 = math.tanh %390 : vector<8x128xf32>
    %397 = vector.extract_strided_slice %395 {offsets = [0, 0], sizes = [8, 32], strides = [1, 1]} : vector<8x128xf32> to vector<8x32xf32>
    %398 = vector.extract_strided_slice %395 {offsets = [0, 32], sizes = [8, 32], strides = [1, 1]} : vector<8x128xf32> to vector<8x32xf32>
    %399 = vector.extract_strided_slice %396 {offsets = [0, 64], sizes = [8, 32], strides = [1, 1]} : vector<8x128xf32> to vector<8x32xf32>
    %400 = vector.extract_strided_slice %395 {offsets = [0, 96], sizes = [8, 32], strides = [1, 1]} : vector<8x128xf32> to vector<8x32xf32>
    %401 = arith.mulf %398, %384 : vector<8x32xf32>
    %402 = arith.mulf %397, %399 : vector<8x32xf32>
    %403 = arith.addf %401, %402 : vector<8x32xf32>
    %404 = math.tanh %403 : vector<8x32xf32>
    %405 = arith.mulf %400, %404 : vector<8x32xf32>
    %c24_102 = arith.constant 24 : index
    %c0_103 = arith.constant 0 : index
    %406 = vector.load %arg13[%c24_102, %c0_103] : memref<64x32xf32, #tpu.memory_space<vmem>>, vector<8x32xf32>
    tpu.vector_store %arg13[%c24_102, %c0_103], %405 {strides = array<i32>} : memref<64x32xf32, #tpu.memory_space<vmem>>, vector<8x32xf32>,
    %407 = vector.extract_strided_slice %328 {offsets = [32, 0], sizes = [8, 128], strides = [1, 1]} : vector<64x128xf32> to vector<8x128xf32>
    %cst_104 = arith.constant dense<0.000000e+00> : vector<8x128xf32>
    %408 = tpu.matmul %405, %324, %cst_104 {dimension_numbers = #tpu.dot_dimension_numbers<[1], [0], [0], [1], [0, 0, 1, 1], [], []>} : vector<8x32xf32>, vector<32x128xf32>, vector<8x128xf32> -> vector<8x128xf32>
    %409 = arith.addf %407, %408 : vector<8x128xf32>
    %410 = arith.negf %409 : vector<8x128xf32>
    %411 = math.exp %410 : vector<8x128xf32>
    %cst_105 = arith.constant 1.000000e+00 : f32
    %412 = vector.broadcast %cst_105 : f32 to vector<8x128xf32>
    %413 = arith.addf %412, %411 : vector<8x128xf32>
    %414 = arith.divf %412, %413 : vector<8x128xf32>
    %415 = math.tanh %409 : vector<8x128xf32>
    %416 = vector.extract_strided_slice %414 {offsets = [0, 0], sizes = [8, 32], strides = [1, 1]} : vector<8x128xf32> to vector<8x32xf32>
    %417 = vector.extract_strided_slice %414 {offsets = [0, 32], sizes = [8, 32], strides = [1, 1]} : vector<8x128xf32> to vector<8x32xf32>
    %418 = vector.extract_strided_slice %415 {offsets = [0, 64], sizes = [8, 32], strides = [1, 1]} : vector<8x128xf32> to vector<8x32xf32>
    %419 = vector.extract_strided_slice %414 {offsets = [0, 96], sizes = [8, 32], strides = [1, 1]} : vector<8x128xf32> to vector<8x32xf32>
    %420 = arith.mulf %417, %403 : vector<8x32xf32>
    %421 = arith.mulf %416, %418 : vector<8x32xf32>
    %422 = arith.addf %420, %421 : vector<8x32xf32>
    %423 = math.tanh %422 : vector<8x32xf32>
    %424 = arith.mulf %419, %423 : vector<8x32xf32>
    %c32_106 = arith.constant 32 : index
    %c0_107 = arith.constant 0 : index
    %425 = vector.load %arg13[%c32_106, %c0_107] : memref<64x32xf32, #tpu.memory_space<vmem>>, vector<8x32xf32>
    tpu.vector_store %arg13[%c32_106, %c0_107], %424 {strides = array<i32>} : memref<64x32xf32, #tpu.memory_space<vmem>>, vector<8x32xf32>,
    %426 = vector.extract_strided_slice %328 {offsets = [40, 0], sizes = [8, 128], strides = [1, 1]} : vector<64x128xf32> to vector<8x128xf32>
    %cst_108 = arith.constant dense<0.000000e+00> : vector<8x128xf32>
    %427 = tpu.matmul %424, %324, %cst_108 {dimension_numbers = #tpu.dot_dimension_numbers<[1], [0], [0], [1], [0, 0, 1, 1], [], []>} : vector<8x32xf32>, vector<32x128xf32>, vector<8x128xf32> -> vector<8x128xf32>
    %428 = arith.addf %426, %427 : vector<8x128xf32>
    %429 = arith.negf %428 : vector<8x128xf32>
    %430 = math.exp %429 : vector<8x128xf32>
    %cst_109 = arith.constant 1.000000e+00 : f32
    %431 = vector.broadcast %cst_109 : f32 to vector<8x128xf32>
    %432 = arith.addf %431, %430 : vector<8x128xf32>
    %433 = arith.divf %431, %432 : vector<8x128xf32>
    %434 = math.tanh %428 : vector<8x128xf32>
    %435 = vector.extract_strided_slice %433 {offsets = [0, 0], sizes = [8, 32], strides = [1, 1]} : vector<8x128xf32> to vector<8x32xf32>
    %436 = vector.extract_strided_slice %433 {offsets = [0, 32], sizes = [8, 32], strides = [1, 1]} : vector<8x128xf32> to vector<8x32xf32>
    %437 = vector.extract_strided_slice %434 {offsets = [0, 64], sizes = [8, 32], strides = [1, 1]} : vector<8x128xf32> to vector<8x32xf32>
    %438 = vector.extract_strided_slice %433 {offsets = [0, 96], sizes = [8, 32], strides = [1, 1]} : vector<8x128xf32> to vector<8x32xf32>
    %439 = arith.mulf %436, %422 : vector<8x32xf32>
    %440 = arith.mulf %435, %437 : vector<8x32xf32>
    %441 = arith.addf %439, %440 : vector<8x32xf32>
    %442 = math.tanh %441 : vector<8x32xf32>
    %443 = arith.mulf %438, %442 : vector<8x32xf32>
    %c40_110 = arith.constant 40 : index
    %c0_111 = arith.constant 0 : index
    %444 = vector.load %arg13[%c40_110, %c0_111] : memref<64x32xf32, #tpu.memory_space<vmem>>, vector<8x32xf32>
    tpu.vector_store %arg13[%c40_110, %c0_111], %443 {strides = array<i32>} : memref<64x32xf32, #tpu.memory_space<vmem>>, vector<8x32xf32>,
    %445 = vector.extract_strided_slice %328 {offsets = [48, 0], sizes = [8, 128], strides = [1, 1]} : vector<64x128xf32> to vector<8x128xf32>
    %cst_112 = arith.constant dense<0.000000e+00> : vector<8x128xf32>
    %446 = tpu.matmul %443, %324, %cst_112 {dimension_numbers = #tpu.dot_dimension_numbers<[1], [0], [0], [1], [0, 0, 1, 1], [], []>} : vector<8x32xf32>, vector<32x128xf32>, vector<8x128xf32> -> vector<8x128xf32>
    %447 = arith.addf %445, %446 : vector<8x128xf32>
    %448 = arith.negf %447 : vector<8x128xf32>
    %449 = math.exp %448 : vector<8x128xf32>
    %cst_113 = arith.constant 1.000000e+00 : f32
    %450 = vector.broadcast %cst_113 : f32 to vector<8x128xf32>
    %451 = arith.addf %450, %449 : vector<8x128xf32>
    %452 = arith.divf %450, %451 : vector<8x128xf32>
    %453 = math.tanh %447 : vector<8x128xf32>
    %454 = vector.extract_strided_slice %452 {offsets = [0, 0], sizes = [8, 32], strides = [1, 1]} : vector<8x128xf32> to vector<8x32xf32>
    %455 = vector.extract_strided_slice %452 {offsets = [0, 32], sizes = [8, 32], strides = [1, 1]} : vector<8x128xf32> to vector<8x32xf32>
    %456 = vector.extract_strided_slice %453 {offsets = [0, 64], sizes = [8, 32], strides = [1, 1]} : vector<8x128xf32> to vector<8x32xf32>
    %457 = vector.extract_strided_slice %452 {offsets = [0, 96], sizes = [8, 32], strides = [1, 1]} : vector<8x128xf32> to vector<8x32xf32>
    %458 = arith.mulf %455, %441 : vector<8x32xf32>
    %459 = arith.mulf %454, %456 : vector<8x32xf32>
    %460 = arith.addf %458, %459 : vector<8x32xf32>
    %461 = math.tanh %460 : vector<8x32xf32>
    %462 = arith.mulf %457, %461 : vector<8x32xf32>
    %c48_114 = arith.constant 48 : index
    %c0_115 = arith.constant 0 : index
    %463 = vector.load %arg13[%c48_114, %c0_115] : memref<64x32xf32, #tpu.memory_space<vmem>>, vector<8x32xf32>
    tpu.vector_store %arg13[%c48_114, %c0_115], %462 {strides = array<i32>} : memref<64x32xf32, #tpu.memory_space<vmem>>, vector<8x32xf32>,
    %464 = vector.extract_strided_slice %328 {offsets = [56, 0], sizes = [8, 128], strides = [1, 1]} : vector<64x128xf32> to vector<8x128xf32>
    %cst_116 = arith.constant dense<0.000000e+00> : vector<8x128xf32>
    %465 = tpu.matmul %462, %324, %cst_116 {dimension_numbers = #tpu.dot_dimension_numbers<[1], [0], [0], [1], [0, 0, 1, 1], [], []>} : vector<8x32xf32>, vector<32x128xf32>, vector<8x128xf32> -> vector<8x128xf32>
    %466 = arith.addf %464, %465 : vector<8x128xf32>
    %467 = arith.negf %466 : vector<8x128xf32>
    %468 = math.exp %467 : vector<8x128xf32>
    %cst_117 = arith.constant 1.000000e+00 : f32
    %469 = vector.broadcast %cst_117 : f32 to vector<8x128xf32>
    %470 = arith.addf %469, %468 : vector<8x128xf32>
    %471 = arith.divf %469, %470 : vector<8x128xf32>
    %472 = math.tanh %466 : vector<8x128xf32>
    %473 = vector.extract_strided_slice %471 {offsets = [0, 0], sizes = [8, 32], strides = [1, 1]} : vector<8x128xf32> to vector<8x32xf32>
    %474 = vector.extract_strided_slice %471 {offsets = [0, 32], sizes = [8, 32], strides = [1, 1]} : vector<8x128xf32> to vector<8x32xf32>
    %475 = vector.extract_strided_slice %472 {offsets = [0, 64], sizes = [8, 32], strides = [1, 1]} : vector<8x128xf32> to vector<8x32xf32>
    %476 = vector.extract_strided_slice %471 {offsets = [0, 96], sizes = [8, 32], strides = [1, 1]} : vector<8x128xf32> to vector<8x32xf32>
    %477 = arith.mulf %474, %460 : vector<8x32xf32>
    %478 = arith.mulf %473, %475 : vector<8x32xf32>
    %479 = arith.addf %477, %478 : vector<8x32xf32>
    %480 = math.tanh %479 : vector<8x32xf32>
    %481 = arith.mulf %476, %480 : vector<8x32xf32>
    %c56_118 = arith.constant 56 : index
    %c0_119 = arith.constant 0 : index
    %482 = vector.load %arg13[%c56_118, %c0_119] : memref<64x32xf32, #tpu.memory_space<vmem>>, vector<8x32xf32>
    tpu.vector_store %arg13[%c56_118, %c0_119], %481 {strides = array<i32>} : memref<64x32xf32, #tpu.memory_space<vmem>>, vector<8x32xf32>,
    %c0_120 = arith.constant 0 : index
    %c0_121 = arith.constant 0 : index
    %483 = vector.load %arg13[%c0_120, %c0_121] : memref<64x32xf32, #tpu.memory_space<vmem>>, vector<64x32xf32>
    %c0_122 = arith.constant 0 : index
    %c0_123 = arith.constant 0 : index
    %484 = vector.load %arg10[%c0_122, %c0_123] : memref<32x128xf32, #tpu.memory_space<vmem>>, vector<32x128xf32>
    %cst_124 = arith.constant dense<0.000000e+00> : vector<64x128xf32>
    %485 = tpu.matmul %483, %484, %cst_124 {dimension_numbers = #tpu.dot_dimension_numbers<[1], [0], [0], [1], [0, 0, 1, 1], [], []>} : vector<64x32xf32>, vector<32x128xf32>, vector<64x128xf32> -> vector<64x128xf32>
    %c0_125 = arith.constant 0 : index
    %c0_126 = arith.constant 0 : index
    %486 = vector.load %arg11[%c0_125, %c0_126] : memref<1x128xf32, #tpu.memory_space<vmem>>, vector<1x128xf32>
    %487 = vector.broadcast %486 : vector<1x128xf32> to vector<64x128xf32>
    %488 = arith.addf %485, %487 : vector<64x128xf32>
    %c0_127 = arith.constant 0 : index
    %c0_128 = arith.constant 0 : index
    %489 = vector.load %arg12[%c0_127, %c0_128] : memref<64x128xf32, #tpu.memory_space<vmem>>, vector<64x128xf32>
    tpu.vector_store %arg12[%c0_127, %c0_128], %488 {strides = array<i32>} : memref<64x128xf32, #tpu.memory_space<vmem>>, vector<64x128xf32>,
    return
  }
}

</mosaic_0001>

<bundles_post_ra>
// kernel: tpu_custom_call.1
= control target key start
LH: loop header
LB: loop body
LE: loop exit
PB: predicated region body
PF: predicated region fallthrough
CT: control target
= control target key end

     0   :  { %17 = vsyncpa [#allocation4], 0  ;;  %s4932_s0 = inlined_call_operand.vmem [shape: f32[64,16], index: 0, kind: input, shape index: {}]   ;;  %s4933_s1 = inlined_call_operand.hbm [shape: f32[16,128], index: 1, kind: input, shape index: {}]   ;;  %s4934_s2 = inlined_call_operand.vmem [shape: f32[32,128], index: 2, kind: input, shape index: {}]   ;;  %s4935_s3 = inlined_call_operand.vmem [shape: f32[1,128], index: 3, kind: input, shape index: {}]   ;;  %s4936_s4 = inlined_call_operand.vmem [shape: f32[32,128], index: 4, kind: input, shape index: {}]   ;;  %s4937_s5 = inlined_call_operand.vmem [shape: f32[32,128], index: 5, kind: input, shape index: {}]   ;;  %s4938_s6 = inlined_call_operand.vmem [shape: f32[1,128], index: 6, kind: input, shape index: {}]   ;;  %s4939_s7 = inlined_call_operand.hbm [shape: f32[32,128], index: 7, kind: input, shape index: {}]   ;;  %s4940_s8 = inlined_call_operand.hbm [shape: f32[32,128], index: 8, kind: input, shape index: {}]   ;;  %s4941_s9 = inlined_call_operand.vmem [shape: f32[1,128], index: 9, kind: input, shape index: {}]   ;;  %s4942_s10 = inlined_call_operand.hbm [shape: f32[32,128], index: 10, kind: input, shape index: {}]   ;;  %s4943_s11 = inlined_call_operand.vmem [shape: f32[1,128], index: 11, kind: input, shape index: {}]   ;;  %s4944_s12 = inlined_call_operand.hbm [shape: f32[64,128], index: 12, kind: output, shape index: {}]  }
   0x1   :  { %18 = vsyncpa [#allocation7], 0 }
   0x2   :  { %19 = vsyncpa [#allocation10], 0 }
   0x3   :  { %20 = vsyncpa [#allocation5], 0  ;;  %s4256_s21 = smov [#allocation6]   ;;  %s4257_s23 = smov [#allocation3]  }
   0x4   :  { %s50_s22 = sshll.u32 %s4256_s21, 4  ;;  %s28_s24 = sshll.u32 %s4257_s23, 4  ;;  %s51_s22 = int_to_ptr.vmem [resolvable:$true] %s50_s22  ;;  %s4333_s24 = int_to_ptr.vmem [resolvable:$true] %s28_s24 }
   0x5   :  { %s4138_s27 = scalar_lea.hbm %s4939_s7, 512 }
   0x6   :  { %p4139_p0 = scmp.ne.s32.totalorder %s4939_s7, %s4138_s27  ;;  %p4142_p1 = scmp.lt.u32.totalorder %s4138_s27, %s4939_s7 }
   0x8   :  { %p4144_p2 = pnand %p4142_p1, %p4139_p0 }
   0xa   :  { %4147 = shalt.err (!%p4144_p2)
}
   0xb   :  { %s4148_s14 = scalar_lea.vmem %s51_s22, 512  ;;  %p4153_p4 = scmp.lt.s32.totalorder %s51_s22, %s51_s22 }
   0xc   :  { %p4149_p3 = scmp.ne.s32.totalorder %s51_s22, %s4148_s14  ;;  %p4154_p5 = scmp.lt.s32.totalorder %s4148_s14, %s4148_s14 }
   0xe   :  { %p4155_p6 = por %p4154_p5, %p4153_p4 }
  0x10   :  { %p4156_p7 = pnand %p4155_p6, %p4149_p3 }
  0x12   :  { %4159 = shalt.err (!%p4156_p7)
}
  0x13   :  { %s4258_s15 = smov 128   ;;  %s4259_s16 = smov 8  }
  0x14   :  { %56 = dma.hbm_to_vmem [thread:$0]  %s4939_s7, 512, %s51_s22, [#allocation7], %s4258_s15, %s4258_s15, %s4259_s16  }
  0x15   :  { %s4160_s21 = scalar_lea.hbm %s4933_s1, 256 }
  0x16   :  { %p4161_p8 = scmp.ne.s32.totalorder %s4933_s1, %s4160_s21  ;;  %p4164_p9 = scmp.lt.u32.totalorder %s4160_s21, %s4933_s1 }
  0x18   :  { %p4166_p10 = pnand %p4164_p9, %p4161_p8 }
  0x1a   :  { %4169 = shalt.err (!%p4166_p10)
}
  0x1b   :  { %s4170_s28 = scalar_lea.vmem %s4333_s24, 256  ;;  %p4175_p12 = scmp.lt.s32.totalorder %s4333_s24, %s4333_s24 }
  0x1c   :  { %p4171_p11 = scmp.ne.s32.totalorder %s4333_s24, %s4170_s28  ;;  %p4176_p13 = scmp.lt.s32.totalorder %s4170_s28, %s4170_s28 }
  0x1e   :  { %p4177_p0 = por %p4176_p13, %p4175_p12 }
  0x20   :  { %p4178_p1 = pnand %p4177_p0, %p4171_p11 }
  0x22   :  { %4181 = shalt.err (!%p4178_p1)
}
  0x23   :  { %34 = dma.hbm_to_vmem [thread:$0]  %s4933_s1, 256, %s4333_s24, [#allocation4], %s4258_s15, %s4258_s15, %s4259_s16  }
  0x24   :  { %s4260_s29 = smov [#allocation8]   ;;  %s4261_s13 = smov [#allocation9]  }
  0x25   :  { %s62_s30 = sshll.u32 %s4260_s29, 4  ;;  %s76_s14 = sshll.u32 %s4261_s13, 4  ;;  %s63_s30 = int_to_ptr.vmem [resolvable:$true] %s62_s30  ;;  %s4370_s14 = int_to_ptr.vmem [resolvable:$true] %s76_s14 }
  0x26   :  { %s4182_s19 = scalar_lea.hbm %s4940_s8, 512 }
  0x27   :  { %p4183_p2 = scmp.ne.s32.totalorder %s4940_s8, %s4182_s19  ;;  %p4186_p3 = scmp.lt.u32.totalorder %s4182_s19, %s4940_s8 }
  0x29   :  { %p4188_p4 = pnand %p4186_p3, %p4183_p2 }
  0x2b   :  { %4191 = shalt.err (!%p4188_p4)
}
  0x2c   :  { %s4192_s1 = scalar_lea.vmem %s63_s30, 512  ;;  %p4197_p6 = scmp.lt.s32.totalorder %s63_s30, %s63_s30 }
  0x2d   :  { %p4193_p5 = scmp.ne.s32.totalorder %s63_s30, %s4192_s1  ;;  %p4198_p7 = scmp.lt.s32.totalorder %s4192_s1, %s4192_s1 }
  0x2f   :  { %p4199_p8 = por %p4198_p7, %p4197_p6 }
  0x31   :  { %p4200_p9 = pnand %p4199_p8, %p4193_p5 }
  0x33   :  { %4203 = shalt.err (!%p4200_p9)
}
  0x34   :  { %68 = dma.hbm_to_vmem [thread:$0]  %s4940_s8, 512, %s63_s30, [#allocation7], %s4258_s15, %s4258_s15, %s4259_s16  }
  0x35   :  { %s4204_s7 = scalar_lea.hbm %s4942_s10, 512 }
  0x36   :  { %p4205_p10 = scmp.ne.s32.totalorder %s4942_s10, %s4204_s7  ;;  %p4208_p11 = scmp.lt.u32.totalorder %s4204_s7, %s4942_s10 }
  0x38   :  { %p4210_p12 = pnand %p4208_p11, %p4205_p10 }
  0x3a   :  { %4213 = shalt.err (!%p4210_p12)
}
  0x3b   :  { %s4214_s18 = scalar_lea.vmem %s4370_s14, 512  ;;  %p4219_p0 = scmp.lt.s32.totalorder %s4370_s14, %s4370_s14 }
  0x3c   :  { %p4215_p13 = scmp.ne.s32.totalorder %s4370_s14, %s4214_s18  ;;  %p4220_p1 = scmp.lt.s32.totalorder %s4214_s18, %s4214_s18 }
  0x3e   :  { %p4221_p2 = por %p4220_p1, %p4219_p0 }
  0x40   :  { %p4222_p3 = pnand %p4221_p2, %p4215_p13 }
  0x42   :  { %4225 = shalt.err (!%p4222_p3)
}
  0x43   :  { %82 = dma.hbm_to_vmem [thread:$0]  %s4942_s10, 512, %s4370_s14, [#allocation10], %s4258_s15, %s4258_s15, %s4259_s16  }
  0x44   :  { %4248 = dma.done.wait [#allocation4], 256  }
  0x45   :  { %4249 = vsyncadd [#allocation4], 4294967040 }
  0x46   :  { %4250 = dma.done.wait [#allocation7], 1024  }
  0x47   :  { %4251 = vsyncadd [#allocation7], 4294966272 }
  0x48   :  { %4252 = dma.done.wait [#allocation10], 512  }
  0x49   :  { %4253 = vsyncadd [#allocation10], 4294966784  ;;  %vm118_vm0 = vcmask 130048   ;;  %v105_v0 = vld [vmem:[#allocation3] sm:$0xff]  ;;  %v106_v1 = vld [vmem:[#allocation3 + $0x8] sm:$0xff]  ;;  %v4262_v10 = vmov 0.0|0.0  }
  0x4a   :  { %v101_v2 = vld [vmem:[%s4932_s0 + $0x20] sm:$0xff]  ;;  %v3760_v3 = vpack.c.bf16 %v106_v1, %v105_v0  ;;  %v108_v5 = vld [vmem:[%s4934_s2 + $0x8] sm:$0xff]  ;;  %v103_v11 = vld [vmem:[%s4932_s0 + $0x30] sm:$0xff]  ;;  %vm4263_vm1 = vmmov 0   ;;  %v4264_v16 = vmov 0.0   ;;  %s4265_s20 = smov 64  }
  0x4b   :  { %3430 = vmatprep.mubr.msk.f32.mxu1 %vm118_vm0, %v101_v2  ;;  %v107_v4 = vld [vmem:[%s4934_s2] sm:$0xff]  ;;  %v102_v7 = vld [vmem:[%s4932_s0 + $0x28] sm:$0xff]  ;;  %v109_v12 = vld [vmem:[%s4934_s2 + $0x10] sm:$0xff]  ;;  %vm248_vm2 = vcmask 261120  }
  0x4c   :  { %v97_v6 = vld [vmem:[%s4932_s0] sm:$0xff]  ;;  %3932 = vmatprep.subr.bf16.mxu1 %v3760_v3  ;;  %3761 = vmatprep.subr.bf16.mxu0 %v3760_v3  ;;  %v4423_v8 = vpack.c.bf16 %v108_v5, %v107_v4  ;;  %v98_v9 = vld [vmem:[%s4932_s0 + $0x8] sm:$0xff]  ;;  %v110_v13 = vld [vmem:[%s4934_s2 + $0x18] sm:$0xff] }
  0x4d   :  { %3933 = vmatpush3.bf16.msra.mxu1 %v3760_v3  ;;  %3763 = vmatpush3.bf16.msra.mxu0 %v3760_v3  ;;  %v104_v14 = vld [vmem:[%s4932_s0 + $0x38] sm:$0xff]  ;;  %v4447_v15 = vpack.c.bf16 %v110_v13, %v109_v12  ;;  %v4473_v21 = vld [vmem:[%s4935_s3] ss:$0 sm:$0xff]  ;;  %s4266_s3 = smov 32   ;;  %v99_v56 = vld [vmem:[%s4932_s0 + $0x10] sm:$0xff] }
  0x4e   :  { %3764 = vmatprep.subr.bf16.mxu1 %v4262_v10  ;;  %3424 = vmatprep.mubr.msk.f32.mxu0 %vm118_vm0, %v97_v6  ;;  %v100_v57 = vld [vmem:[%s4932_s0 + $0x18] sm:$0xff] }
  0x4f   :  { %3776 = vmatprep.subr.bf16.mxu0 %v4262_v10 }
  0x50   :  { %3431 = vmatmul.mubr.msk.f32.vlgmr.msra.gmra.mrb[0].mxu1 %vm118_vm0, %v102_v7  ;;  %3425 = vmatmul.mubr.msk.f32.vlgmr.msra.gmra.mrb[0].mxu0 %vm118_vm0, %v98_v9 }
  0x51   :  { %3766 = vmatpush3.bf16.msra.mxu1 %v4423_v8  ;;  %3433 = vmatprep.mubr.msk.f32.mxu1 %vm118_vm0, %v103_v11 }
  0x52   :  { %3767 = vmatprep.subr.bf16.mxu1 %v4262_v10  ;;  %3778 = vmatpush3.bf16.msra.mxu0 %v4423_v8 }
  0x53   :  { %3779 = vmatprep.subr.bf16.mxu0 %v4262_v10  ;;  %3427 = vmatprep.mubr.msk.f32.mxu0 %vm118_vm0, %v99_v56 }
  0x54   :  { %3434 = vmatmul.mubr.msk.f32.gmra.mrb[2].mxu1 %vm118_vm0, %v104_v14  ;;  %3428 = vmatmul.mubr.msk.f32.gmra.mrb[2].mxu0 %vm118_vm0, %v100_v57 }
  0x55   :  { %3769 = vmatpush3.bf16.msra.mxu1 %v4447_v15  ;;  %3444 = vmatprep.mubr.msk.f32.mxu1 %vm4263_vm1, %v4264_v16 }
  0x56   :  { %3770 = vmatprep.subr.bf16.mxu1 %v4262_v10  ;;  %3781 = vmatpush3.bf16.msra.mxu0 %v4447_v15 }
  0x57   :  { %3788 = vmatprep.subr.bf16.mxu0 %v4262_v10  ;;  %3466 = vmatprep.mubr.msk.f32.mxu0 %vm4263_vm1, %v4264_v16 }
  0x58   :  { %3445 = vmatmul.mubr.f32.vlgmr.msra.gmra.mrb[4].mxu1 %v4264_v16 }
  0x59   :  { %3772 = vmatpush3.bf16.msra.mxu1 %v4423_v8  ;;  %3455 = vmatprep.mubr.msk.f32.mxu1 %vm4263_vm1, %v4264_v16 }
  0x5a   :  { %3773 = vmatprep.subr.bf16.mxu1 %v4262_v10 }
  0x5d   :  { %3775 = vmatpush3.bf16.msra.mxu1 %v4447_v15 }
  0x5e   :  { %3782 = vmatprep.subr.bf16.mxu1 %v4262_v10 }
 0x123   :  { %v4466_v17 = vpop.f32.mrb[0].mxu1  ;;  %v3426_v18 = vpop.f32.mrb[0].mxu0 }
 0x124   :  { %v4468_v19 = vpop.f32.mrb[1].mxu1  ;;  %v209_v20 = vpop.f32.mrb[1].mxu0  ;;  %v215_v42 = vadd.f32 %v3426_v18, %v4473_v21 }
 0x125   :  { %v210_v24 = vadd.f32 %v4473_v21, %v209_v20 }
 0x127   :  { %v4475_v22 = vpop.f32.mrb[2].mxu1  ;;  %v3429_v61 = vpop.f32.mrb[2].mxu0 }
 0x128   :  { %v4477_v23 = vpop.f32.mrb[3].mxu1  ;;  %v219_v62 = vpop.f32.mrb[3].mxu0 }
 0x129   :  { %v220_v0 = vadd.f32 %v4473_v21, %v219_v62  ;;  %v235_v62 = vadd.f32 %v4466_v17, %v4473_v21 }
 0x12b   :  { %v318_v25 = vpop.f32.mrb[4].mxu1 }
 0x12c   :  { %v322_v26 = vadd.f32 %v318_v25, %v210_v24  ;;  %v3446_v27 = vpop.f32.mrb[5].mxu1 }
 0x12d   :  { %v225_v27 = vadd.f32 %v3429_v61, %v4473_v21 }
 0x12e   :  { %3946 = vtanh.f32 %v322_v26  ;;  %v3182_v29 = vmul.f32 -1.442695, %v322_v26 }
 0x130   :  { %3948 = vpow2.f32 %v3182_v29 }
 0x138   :  { %v3947_v28 = vpop.eup %3946 }
 0x139   :  { %332 = vrot.lane.b32.xlu0 %v3947_v28, %s4265_s20 }
 0x13a   :  { %v3949_v30 = vpop.eup %3948 }
 0x13b   :  { %v326_v31 = vadd.f32 1.0, %v3949_v30 }
 0x13d   :  { %3950 = vrcp.f32 %v326_v31 }
 0x147   :  { %v3951_v32 = vpop.eup %3950 }
 0x148   :  { %v330_v35 = vmul.f32 0.0, %v3951_v32 }
 0x1ab   :  { %v333_v33 = vpop.permute.xlu0 %332 }
 0x1ac   :  { %v335_v34 = vmul.f32 %v3951_v32, %v333_v33 }
 0x1ae   :  { %337 = vrot.lane.b32.xlu0 %v335_v34, %s4266_s3 }
 0x220   :  { %v338_v36 = vpop.permute.xlu0 %337 }
 0x221   :  { %v340_v37 = vadd.f32 %v338_v36, %v330_v35 }
 0x223   :  { %3952 = vtanh.f32 %v340_v37 }
 0x22d   :  { %v3953_v38 = vpop.eup %3952 }
 0x22e   :  { %343 = vrot.lane.b32.xlu1 %v3953_v38, %s4265_s20 }
 0x2a0   :  { %v344_v39 = vpop.permute.xlu1 %343 }
 0x2a1   :  { %v346_v40 = vmul.f32 %v3951_v32, %v344_v39 }
 0x2a3   :  { %348 = vrot.lane.b32.xlu1 %v346_v40, %s4266_s3 }
 0x315   :  { %v349_v41 = vpop.permute.xlu1 %348 }
 0x316   :  { %351 = vst.msk [vmem:[#allocation2] sm:$0xff] %vm248_vm2, %v349_v41  ;;  %3456 = vmatmul.mubr.msk.f32.vlgmr.msra.gmra.mrb[6].mxu1 %vm248_vm2, %v349_v41 }
 0x317   :  { %3784 = vmatpush3.bf16.msra.mxu1 %v4423_v8  ;;  %3477 = vmatprep.mubr.msk.f32.mxu1 %vm4263_vm1, %v4264_v16 }
 0x318   :  { %3785 = vmatprep.subr.bf16.mxu1 %v4262_v10 }
 0x31b   :  { %3787 = vmatpush3.bf16.msra.mxu1 %v4447_v15 }
 0x31c   :  { %3794 = vmatprep.subr.bf16.mxu1 %v4262_v10 }
 0x3e9   :  { %v420_v43 = vpop.f32.mrb[6].mxu1 }
 0x3ea   :  { %v424_v44 = vadd.f32 %v420_v43, %v215_v42  ;;  %v3457_v45 = vpop.f32.mrb[7].mxu1 }
 0x3eb   :  { %v230_v45 = vadd.f32 %v4473_v21, %v4468_v19 }
 0x3ec   :  { %3954 = vtanh.f32 %v424_v44  ;;  %v3184_v47 = vmul.f32 -1.442695, %v424_v44 }
 0x3ee   :  { %3956 = vpow2.f32 %v3184_v47 }
 0x3f6   :  { %v3955_v46 = vpop.eup %3954 }
 0x3f7   :  { %434 = vrot.lane.b32.xlu0 %v3955_v46, %s4265_s20 }
 0x3f8   :  { %v3957_v48 = vpop.eup %3956 }
 0x3f9   :  { %v428_v49 = vadd.f32 1.0, %v3957_v48 }
 0x3fb   :  { %3958 = vrcp.f32 %v428_v49 }
 0x405   :  { %v3959_v50 = vpop.eup %3958 }
 0x406   :  { %v432_v53 = vmul.f32 %v3959_v50, %v340_v37 }
 0x469   :  { %v435_v51 = vpop.permute.xlu0 %434 }
 0x46a   :  { %v437_v52 = vmul.f32 %v3959_v50, %v435_v51 }
 0x46c   :  { %439 = vrot.lane.b32.xlu1 %v437_v52, %s4266_s3 }
 0x4de   :  { %v440_v54 = vpop.permute.xlu1 %439 }
 0x4df   :  { %v442_v55 = vadd.f32 %v440_v54, %v432_v53 }
 0x4e1   :  { %3960 = vtanh.f32 %v442_v55 }
 0x4eb   :  { %v3961_v58 = vpop.eup %3960 }
 0x4ec   :  { %445 = vrot.lane.b32.xlu0 %v3961_v58, %s4265_s20 }
 0x55e   :  { %v446_v59 = vpop.permute.xlu0 %445 }
 0x55f   :  { %v448_v60 = vmul.f32 %v3959_v50, %v446_v59 }
 0x561   :  { %450 = vrot.lane.b32.xlu1 %v448_v60, %s4266_s3 }
 0x5d3   :  { %v451_v63 = vpop.permute.xlu1 %450 }
 0x5d4   :  { %453 = vst.msk [vmem:[#allocation2 + $0x8] sm:$0xff] %vm248_vm2, %v451_v63  ;;  %3467 = vmatmul.mubr.msk.f32.vlgmr.msra.gmra.mrb[4].mxu0 %vm248_vm2, %v451_v63 }
 0x5d5   :  { %3790 = vmatpush3.bf16.msra.mxu0 %v4423_v8  ;;  %3488 = vmatprep.mubr.msk.f32.mxu0 %vm4263_vm1, %v4264_v16 }
 0x5d6   :  { %3791 = vmatprep.subr.bf16.mxu0 %v4262_v10 }
 0x5d9   :  { %3793 = vmatpush3.bf16.msra.mxu0 %v4447_v15 }
 0x5da   :  { %3800 = vmatprep.subr.bf16.mxu0 %v4262_v10 }
 0x6a7   :  { %v522_v1 = vpop.f32.mrb[4].mxu0 }
 0x6a8   :  { %v526_v2 = vadd.f32 %v522_v1, %v220_v0  ;;  %v3468_v3 = vpop.f32.mrb[5].mxu0 }
 0x6aa   :  { %3962 = vtanh.f32 %v526_v2  ;;  %v3186_v5 = vmul.f32 -1.442695, %v526_v2 }
 0x6ac   :  { %3964 = vpow2.f32 %v3186_v5 }
 0x6b4   :  { %v3963_v4 = vpop.eup %3962 }
 0x6b5   :  { %536 = vrot.lane.b32.xlu0 %v3963_v4, %s4265_s20 }
 0x6b6   :  { %v3965_v6 = vpop.eup %3964 }
 0x6b7   :  { %v530_v7 = vadd.f32 1.0, %v3965_v6 }
 0x6b9   :  { %3966 = vrcp.f32 %v530_v7 }
 0x6c3   :  { %v3967_v9 = vpop.eup %3966 }
 0x6c4   :  { %v534_v13 = vmul.f32 %v3967_v9, %v442_v55 }
 0x727   :  { %v537_v11 = vpop.permute.xlu0 %536 }
 0x728   :  { %v539_v12 = vmul.f32 %v3967_v9, %v537_v11  ;;  %v1074_v11 = vld [vmem:[%s4936_s4] sm:$0xff] }
 0x72a   :  { %541 = vrot.lane.b32.xlu1 %v539_v12, %s4266_s3  ;;  %v1075_v12 = vld [vmem:[%s4936_s4 + $0x8] sm:$0xff] }
 0x79c   :  { %v542_v14 = vpop.permute.xlu1 %541 }
 0x79d   :  { %v544_v18 = vadd.f32 %v542_v14, %v534_v13  ;;  %v3812_v13 = vpack.c.bf16 %v1075_v12, %v1074_v11 }
 0x79f   :  { %3968 = vtanh.f32 %v544_v18 }
 0x7a9   :  { %v3969_v20 = vpop.eup %3968 }
 0x7aa   :  { %547 = vrot.lane.b32.xlu0 %v3969_v20, %s4265_s20 }
 0x81c   :  { %v548_v24 = vpop.permute.xlu0 %547 }
 0x81d   :  { %v550_v25 = vmul.f32 %v3967_v9, %v548_v24  ;;  %v1076_v24 = vld [vmem:[%s4936_s4 + $0x10] sm:$0xff] }
 0x81f   :  { %552 = vrot.lane.b32.xlu1 %v550_v25, %s4266_s3  ;;  %v1077_v25 = vld [vmem:[%s4936_s4 + $0x18] sm:$0xff] }
 0x891   :  { %v553_v26 = vpop.permute.xlu1 %552 }
 0x892   :  { %555 = vst.msk [vmem:[#allocation2 + $0x10] sm:$0xff] %vm248_vm2, %v553_v26  ;;  %3478 = vmatmul.mubr.msk.f32.vlgmr.msra.gmra.mrb[8].mxu1 %vm248_vm2, %v553_v26  ;;  %v3816_v26 = vpack.c.bf16 %v1077_v25, %v1076_v24 }
 0x893   :  { %3796 = vmatpush3.bf16.msra.mxu1 %v4423_v8  ;;  %3499 = vmatprep.mubr.msk.f32.mxu1 %vm4263_vm1, %v4264_v16 }
 0x894   :  { %3797 = vmatprep.subr.bf16.mxu1 %v4262_v10 }
 0x897   :  { %3799 = vmatpush3.bf16.msra.mxu1 %v4447_v15 }
 0x898   :  { %3806 = vmatprep.subr.bf16.mxu1 %v4262_v10 }
 0x965   :  { %v624_v28 = vpop.f32.mrb[8].mxu1 }
 0x966   :  { %v628_v29 = vadd.f32 %v624_v28, %v225_v27  ;;  %v3479_v30 = vpop.f32.mrb[9].mxu1  ;;  %v1066_v28 = vld [vmem:[#allocation2] sm:$0xff] }
 0x967   :  { %v1068_v30 = vld [vmem:[#allocation2 + $0x10] sm:$0xff] }
 0x968   :  { %3970 = vtanh.f32 %v628_v29  ;;  %v3188_v32 = vmul.f32 -1.442695, %v628_v29  ;;  %v1067_v29 = vld [vmem:[#allocation2 + $0x8] sm:$0xff] }
 0x96a   :  { %3972 = vpow2.f32 %v3188_v32 }
 0x972   :  { %v3971_v31 = vpop.eup %3970 }
 0x973   :  { %638 = vrot.lane.b32.xlu0 %v3971_v31, %s4265_s20 }
 0x974   :  { %v3973_v33 = vpop.eup %3972 }
 0x975   :  { %v632_v34 = vadd.f32 1.0, %v3973_v33 }
 0x977   :  { %3974 = vrcp.f32 %v632_v34  ;;  %v240_v34 = vadd.f32 %v4473_v21, %v4477_v23 }
 0x981   :  { %v3975_v35 = vpop.eup %3974 }
 0x982   :  { %v636_v38 = vmul.f32 %v3975_v35, %v544_v18 }
 0x9e5   :  { %v639_v36 = vpop.permute.xlu0 %638 }
 0x9e6   :  { %v641_v37 = vmul.f32 %v3975_v35, %v639_v36 }
 0x9e8   :  { %643 = vrot.lane.b32.xlu1 %v641_v37, %s4266_s3 }
 0xa5a   :  { %v644_v39 = vpop.permute.xlu1 %643 }
 0xa5b   :  { %v646_v40 = vadd.f32 %v644_v39, %v636_v38 }
 0xa5d   :  { %3976 = vtanh.f32 %v646_v40 }
 0xa67   :  { %v3977_v41 = vpop.eup %3976 }
 0xa68   :  { %649 = vrot.lane.b32.xlu0 %v3977_v41, %s4265_s20 }
 0xada   :  { %v650_v42 = vpop.permute.xlu0 %649 }
 0xadb   :  { %v652_v43 = vmul.f32 %v3975_v35, %v650_v42 }
 0xadd   :  { %654 = vrot.lane.b32.xlu1 %v652_v43, %s4266_s3 }
 0xb4f   :  { %v655_v44 = vpop.permute.xlu1 %654 }
 0xb50   :  { %657 = vst.msk [vmem:[#allocation2 + $0x18] sm:$0xff] %vm248_vm2, %v655_v44  ;;  %3489 = vmatmul.mubr.msk.f32.vlgmr.msra.gmra.mrb[6].mxu0 %vm248_vm2, %v655_v44 }
 0xb51   :  { %3802 = vmatpush3.bf16.msra.mxu0 %v4423_v8  ;;  %3510 = vmatprep.mubr.msk.f32.mxu0 %vm4263_vm1, %v4264_v16 }
 0xb52   :  { %3803 = vmatprep.subr.bf16.mxu0 %v4262_v10 }
 0xb55   :  { %3805 = vmatpush3.bf16.msra.mxu0 %v4447_v15 }
 0xb56   :  { %3813 = vmatprep.subr.bf16.mxu0 %v3812_v13 }
 0xb57   :  { %v1069_v31 = vld [vmem:[#allocation2 + $0x18] sm:$0xff] }
 0xc23   :  { %v726_v46 = vpop.f32.mrb[6].mxu0 }
 0xc24   :  { %v730_v47 = vadd.f32 %v726_v46, %v230_v45  ;;  %v3490_v48 = vpop.f32.mrb[7].mxu0 }
 0xc26   :  { %3978 = vtanh.f32 %v730_v47  ;;  %v3190_v50 = vmul.f32 -1.442695, %v730_v47 }
 0xc28   :  { %3980 = vpow2.f32 %v3190_v50 }
 0xc30   :  { %v3979_v49 = vpop.eup %3978 }
 0xc31   :  { %740 = vrot.lane.b32.xlu0 %v3979_v49, %s4265_s20 }
 0xc32   :  { %v3981_v51 = vpop.eup %3980 }
 0xc33   :  { %v734_v52 = vadd.f32 1.0, %v3981_v51 }
 0xc35   :  { %3982 = vrcp.f32 %v734_v52 }
 0xc3f   :  { %v3983_v53 = vpop.eup %3982 }
 0xc40   :  { %v738_v56 = vmul.f32 %v3983_v53, %v646_v40 }
 0xca3   :  { %v741_v54 = vpop.permute.xlu0 %740 }
 0xca4   :  { %v743_v55 = vmul.f32 %v3983_v53, %v741_v54  ;;  %v1078_v54 = vld [vmem:[%s4937_s5] sm:$0xff] }
 0xca6   :  { %745 = vrot.lane.b32.xlu1 %v743_v55, %s4266_s3  ;;  %v1079_v55 = vld [vmem:[%s4937_s5 + $0x8] sm:$0xff] }
 0xd18   :  { %v746_v57 = vpop.permute.xlu1 %745 }
 0xd19   :  { %v748_v19 = vadd.f32 %v746_v57, %v738_v56  ;;  %v4605_v56 = vpack.c.bf16 %v1079_v55, %v1078_v54  ;;  %v1080_v57 = vld [vmem:[%s4937_s5 + $0x10] sm:$0xff] }
 0xd1b   :  { %3984 = vtanh.f32 %v748_v19 }
 0xd25   :  { %v3985_v58 = vpop.eup %3984 }
 0xd26   :  { %751 = vrot.lane.b32.xlu0 %v3985_v58, %s4265_s20 }
 0xd98   :  { %v752_v59 = vpop.permute.xlu0 %751 }
 0xd99   :  { %v754_v60 = vmul.f32 %v3983_v53, %v752_v59 }
 0xd9b   :  { %756 = vrot.lane.b32.xlu1 %v754_v60, %s4266_s3 }
 0xe0d   :  { %v757_v61 = vpop.permute.xlu1 %756 }
 0xe0e   :  { %759 = vst.msk [vmem:[#allocation2 + $0x20] sm:$0xff] %vm248_vm2, %v757_v61  ;;  %3500 = vmatmul.mubr.msk.f32.vlgmr.msra.gmra.mrb[10].mxu1 %vm248_vm2, %v757_v61 }
 0xe0f   :  { %3808 = vmatpush3.bf16.msra.mxu1 %v4423_v8  ;;  %3521 = vmatprep.mubr.msk.f32.mxu1 %vm4263_vm1, %v4264_v16 }
 0xe10   :  { %3809 = vmatprep.subr.bf16.mxu1 %v4262_v10 }
 0xe13   :  { %3811 = vmatpush3.bf16.msra.mxu1 %v4447_v15 }
 0xe14   :  { %3820 = vmatprep.subr.bf16.mxu1 %v4262_v10 }
 0xe15   :  { %v1070_v32 = vld [vmem:[#allocation2 + $0x20] sm:$0xff] }
 0xee1   :  { %v828_v63 = vpop.f32.mrb[10].mxu1 }
 0xee2   :  { %v832_v0 = vadd.f32 %v828_v63, %v235_v62  ;;  %v3501_v1 = vpop.f32.mrb[11].mxu1  ;;  %v245_v63 = vadd.f32 %v4475_v22, %v4473_v21 }
 0xee4   :  { %3986 = vtanh.f32 %v832_v0  ;;  %v3192_v8 = vmul.f32 -1.442695, %v832_v0 }
 0xee6   :  { %3988 = vpow2.f32 %v3192_v8  ;;  %v4641_v8 = vld [vmem:[%s4938_s6] ss:$0 sm:$0xff] }
 0xeee   :  { %v3987_v2 = vpop.eup %3986 }
 0xeef   :  { %842 = vrot.lane.b32.xlu0 %v3987_v2, %s4265_s20 }
 0xef0   :  { %v3989_v3 = vpop.eup %3988 }
 0xef1   :  { %v836_v4 = vadd.f32 1.0, %v3989_v3 }
 0xef3   :  { %3990 = vrcp.f32 %v836_v4 }
 0xefd   :  { %v3991_v5 = vpop.eup %3990 }
 0xefe   :  { %v840_v7 = vmul.f32 %v3991_v5, %v748_v19  ;;  %v1081_v19 = vld [vmem:[%s4937_s5 + $0x18] sm:$0xff] }
 0xeff   :  { %v4615_v58 = vpack.c.bf16 %v1081_v19, %v1080_v57 }
 0xf61   :  { %v843_v6 = vpop.permute.xlu0 %842 }
 0xf62   :  { %v845_v15 = vmul.f32 %v3991_v5, %v843_v6 }
 0xf64   :  { %847 = vrot.lane.b32.xlu1 %v845_v15, %s4266_s3 }
 0xfd6   :  { %v848_v9 = vpop.permute.xlu1 %847 }
 0xfd7   :  { %v850_v17 = vadd.f32 %v848_v9, %v840_v7 }
 0xfd9   :  { %3992 = vtanh.f32 %v850_v17 }
 0xfe3   :  { %v3993_v14 = vpop.eup %3992 }
 0xfe4   :  { %853 = vrot.lane.b32.xlu0 %v3993_v14, %s4265_s20 }
0x1056   :  { %v854_v18 = vpop.permute.xlu0 %853 }
0x1057   :  { %v856_v20 = vmul.f32 %v3991_v5, %v854_v18 }
0x1059   :  { %858 = vrot.lane.b32.xlu1 %v856_v20, %s4266_s3 }
0x10cb   :  { %v859_v27 = vpop.permute.xlu1 %858 }
0x10cc   :  { %861 = vst.msk [vmem:[#allocation2 + $0x28] sm:$0xff] %vm248_vm2, %v859_v27  ;;  %3511 = vmatmul.mubr.msk.f32.vlgmr.msra.gmra.mrb[8].mxu0 %vm248_vm2, %v859_v27 }
0x10cd   :  { %3815 = vmatpush3.bf16.msra.mxu0 %v3812_v13  ;;  %3532 = vmatprep.mubr.msk.f32.mxu0 %vm248_vm2, %v1066_v28 }
0x10ce   :  { %3817 = vmatprep.subr.bf16.mxu0 %v3816_v26 }
0x10d1   :  { %3819 = vmatpush3.bf16.msra.mxu0 %v3816_v26 }
0x10d2   :  { %3832 = vmatprep.subr.bf16.mxu0 %v4262_v10 }
0x10d3   :  { %v1071_v33 = vld [vmem:[#allocation2 + $0x28] sm:$0xff] }
0x10d4   :  { %3533 = vmatmul.mubr.msk.f32.vlgmr.msra.gmra.mrb[10].mxu0 %vm248_vm2, %v1067_v29 }
0x10d5   :  { %3535 = vmatprep.mubr.msk.f32.mxu0 %vm248_vm2, %v1068_v30  ;;  %3834 = vmatpush3.bf16.msra.mxu0 %v4605_v56 }
0x10d6   :  { %3835 = vmatprep.subr.bf16.mxu0 %v4262_v10 }
0x10d8   :  { %3536 = vmatmul.mubr.msk.f32.gmra.mrb[12].mxu0 %vm248_vm2, %v1069_v31 }
0x10d9   :  { %3538 = vmatprep.mubr.msk.f32.mxu0 %vm248_vm2, %v1070_v32  ;;  %3837 = vmatpush3.bf16.msra.mxu0 %v4615_v58 }
0x10da   :  { %3844 = vmatprep.subr.bf16.mxu0 %v4262_v10 }
0x10dc   :  { %3539 = vmatmul.mubr.msk.f32.gmra.mrb[14].mxu0 %vm248_vm2, %v1071_v33 }
0x119f   :  { %v930_v35 = vpop.f32.mrb[8].mxu0 }
0x11a0   :  { %v934_v36 = vadd.f32 %v930_v35, %v240_v34  ;;  %v3512_v37 = vpop.f32.mrb[9].mxu0 }
0x11a2   :  { %3994 = vtanh.f32 %v934_v36  ;;  %v3194_v45 = vmul.f32 -1.442695, %v934_v36 }
0x11a4   :  { %3996 = vpow2.f32 %v3194_v45 }
0x11a7   :  { %v4583_v38 = vpop.f32.mrb[10].mxu0 }
0x11a8   :  { %v1179_v39 = vpop.f32.mrb[11].mxu0 }
0x11a9   :  { %v1180_v3 = vadd.f32 %v4641_v8, %v1179_v39 }
0x11ab   :  { %v4585_v40 = vpop.f32.mrb[12].mxu0 }
0x11ac   :  { %v3995_v41 = vpop.eup %3994  ;;  %v4587_v42 = vpop.f32.mrb[13].mxu0 }
0x11ad   :  { %944 = vrot.lane.b32.xlu0 %v3995_v41, %s4265_s20  ;;  %v1185_v41 = vadd.f32 %v4583_v38, %v4641_v8 }
0x11ae   :  { %v3997_v23 = vpop.eup %3996 }
0x11af   :  { %v4590_v43 = vpop.f32.mrb[14].mxu0  ;;  %v938_v46 = vadd.f32 1.0, %v3997_v23 }
0x11b0   :  { %v4592_v44 = vpop.f32.mrb[15].mxu0 }
0x11b1   :  { %3998 = vrcp.f32 %v938_v46 }
0x11bb   :  { %v3999_v47 = vpop.eup %3998 }
0x11bc   :  { %v942_v50 = vmul.f32 %v3999_v47, %v850_v17 }
0x121f   :  { %v945_v48 = vpop.permute.xlu0 %944 }
0x1220   :  { %v947_v49 = vmul.f32 %v3999_v47, %v945_v48 }
0x1222   :  { %949 = vrot.lane.b32.xlu1 %v947_v49, %s4266_s3 }
0x1294   :  { %v950_v51 = vpop.permute.xlu1 %949 }
0x1295   :  { %v4595_v52 = vadd.f32 %v950_v51, %v942_v50 }
0x1297   :  { %4000 = vtanh.f32 %v4595_v52 }
0x12a1   :  { %v4001_v53 = vpop.eup %4000 }
0x12a2   :  { %955 = vrot.lane.b32.xlu0 %v4001_v53, %s4265_s20 }
0x1314   :  { %v956_v59 = vpop.permute.xlu0 %955 }
0x1315   :  { %v958_v60 = vmul.f32 %v3999_v47, %v956_v59 }
0x1317   :  { %960 = vrot.lane.b32.xlu1 %v958_v60, %s4266_s3 }
0x1389   :  { %v961_v61 = vpop.permute.xlu1 %960 }
0x138a   :  { %963 = vst.msk [vmem:[#allocation2 + $0x30] sm:$0xff] %vm248_vm2, %v961_v61  ;;  %3522 = vmatmul.mubr.msk.f32.vlgmr.msra.gmra.mrb[12].mxu1 %vm248_vm2, %v961_v61 }
0x138b   :  { %3822 = vmatpush3.bf16.msra.mxu1 %v4605_v56  ;;  %3552 = vmatprep.mubr.msk.f32.mxu1 %vm4263_vm1, %v4264_v16 }
0x138c   :  { %3823 = vmatprep.subr.bf16.mxu1 %v4262_v10 }
0x138f   :  { %3825 = vmatpush3.bf16.msra.mxu1 %v4615_v58 }
0x1390   :  { %3826 = vmatprep.subr.bf16.mxu1 %v4262_v10 }
0x1391   :  { %v1072_v62 = vld [vmem:[#allocation2 + $0x30] sm:$0xff] }
0x1392   :  { %3553 = vmatmul.mubr.f32.vlgmr.msra.gmra.mrb[14].mxu1 %v4264_v16  ;;  %3541 = vmatprep.mubr.msk.f32.mxu0 %vm248_vm2, %v1072_v62 }
0x1393   :  { %3828 = vmatpush3.bf16.msra.mxu1 %v4605_v56  ;;  %3563 = vmatprep.mubr.msk.f32.mxu1 %vm4263_vm1, %v4264_v16 }
0x1394   :  { %3829 = vmatprep.subr.bf16.mxu1 %v4262_v10 }
0x1397   :  { %3831 = vmatpush3.bf16.msra.mxu1 %v4615_v58 }
0x1398   :  { %3838 = vmatprep.subr.bf16.mxu1 %v4262_v10 }
0x145d   :  { %v1032_v0 = vpop.f32.mrb[12].mxu1 }
0x145e   :  { %v1036_v1 = vadd.f32 %v1032_v0, %v245_v63  ;;  %v3523_v2 = vpop.f32.mrb[13].mxu1 }
0x1460   :  { %v3196_v24 = vmul.f32 -1.442695, %v1036_v1 }
0x1465   :  { %v1284_v4 = vpop.f32.mrb[14].mxu1 }
0x1466   :  { %v1288_v5 = vadd.f32 %v1284_v4, %v1180_v3  ;;  %v3554_v6 = vpop.f32.mrb[15].mxu1 }
0x1468   :  { %4002 = vtanh.f32 %v1288_v5  ;;  %v3206_v7 = vmul.f32 -1.442695, %v1288_v5 }
0x146a   :  { %4004 = vpow2.f32 %v3206_v7 }
0x1472   :  { %v4003_v15 = vpop.eup %4002 }
0x1473   :  { %1298 = vrot.lane.b32.xlu0 %v4003_v15, %s4265_s20 }
0x1474   :  { %v4005_v21 = vpop.eup %4004 }
0x1475   :  { %v1292_v22 = vadd.f32 1.0, %v4005_v21 }
0x1477   :  { %4006 = vrcp.f32 %v1292_v22 }
0x1481   :  { %v4007_v9 = vpop.eup %4006 }
0x1482   :  { %v1296_v12 = vmul.f32 0.0, %v4007_v9 }
0x14e5   :  { %v1299_v17 = vpop.permute.xlu0 %1298 }
0x14e6   :  { %v1301_v11 = vmul.f32 %v4007_v9, %v1299_v17 }
0x14e8   :  { %1303 = vrot.lane.b32.xlu1 %v1301_v11, %s4266_s3 }
0x155a   :  { %v1304_v13 = vpop.permute.xlu1 %1303 }
0x155b   :  { %v1306_v14 = vadd.f32 %v1304_v13, %v1296_v12 }
0x155d   :  { %4008 = vtanh.f32 %v1306_v14 }
0x155e   :  { %4010 = vtanh.f32 %v1036_v1  ;;  %v1190_v1 = vadd.f32 %v4641_v8, %v4587_v42 }
0x155f   :  { %4012 = vpow2.f32 %v3196_v24 }
0x1567   :  { %v4009_v18 = vpop.eup %4008 }
0x1568   :  { %1309 = vrot.lane.b32.xlu0 %v4009_v18, %s4265_s20  ;;  %v4011_v20 = vpop.eup %4010 }
0x1569   :  { %v4013_v25 = vpop.eup %4012 }
0x156a   :  { %v1040_v26 = vadd.f32 1.0, %v4013_v25 }
0x156c   :  { %1046 = vrot.lane.b32.xlu0 %v4011_v20, %s4265_s20  ;;  %4014 = vrcp.f32 %v1040_v26  ;;  %v1195_v20 = vadd.f32 %v4585_v40, %v4641_v8 }
0x1576   :  { %v4015_v29 = vpop.eup %4014 }
0x1577   :  { %v1044_v33 = vmul.f32 %v4015_v29, %v4595_v52 }
0x15da   :  { %v1310_v27 = vpop.permute.xlu0 %1309 }
0x15db   :  { %v1312_v28 = vmul.f32 %v4007_v9, %v1310_v27 }
0x15dd   :  { %1314 = vrot.lane.b32.xlu1 %v1312_v28, %s4266_s3 }
0x15de   :  { %v1047_v30 = vpop.permute.xlu0 %1046 }
0x15df   :  { %v1049_v31 = vmul.f32 %v4015_v29, %v1047_v30 }
0x15e1   :  { %1051 = vrot.lane.b32.xlu0 %v1049_v31, %s4266_s3 }
0x164f   :  { %v1315_v32 = vpop.permute.xlu1 %1314 }
0x1650   :  { %1317 = vst.msk [vmem:[#allocation2] sm:$0xff] %vm248_vm2, %v1315_v32  ;;  %3564 = vmatmul.mubr.msk.f32.vlgmr.msra.gmra.mrb[16].mxu1 %vm248_vm2, %v1315_v32 }
0x1651   :  { %3840 = vmatpush3.bf16.msra.mxu1 %v4605_v56  ;;  %3585 = vmatprep.mubr.msk.f32.mxu1 %vm4263_vm1, %v4264_v16 }
0x1652   :  { %3841 = vmatprep.subr.bf16.mxu1 %v4262_v10 }
0x1653   :  { %v1052_v34 = vpop.permute.xlu0 %1051 }
0x1654   :  { %v1054_v35 = vadd.f32 %v1052_v34, %v1044_v33 }
0x1655   :  { %3843 = vmatpush3.bf16.msra.mxu1 %v4615_v58 }
0x1656   :  { %4016 = vtanh.f32 %v1054_v35  ;;  %3850 = vmatprep.subr.bf16.mxu1 %v4262_v10 }
0x1660   :  { %v4017_v36 = vpop.eup %4016 }
0x1661   :  { %1057 = vrot.lane.b32.xlu0 %v4017_v36, %s4265_s20 }
0x16d3   :  { %v1058_v37 = vpop.permute.xlu0 %1057 }
0x16d4   :  { %v1060_v39 = vmul.f32 %v4015_v29, %v1058_v37 }
0x16d6   :  { %1062 = vrot.lane.b32.xlu0 %v1060_v39, %s4266_s3 }
0x1723   :  { %v1386_v45 = vpop.f32.mrb[16].mxu1 }
0x1724   :  { %v1390_v23 = vadd.f32 %v1386_v45, %v1185_v41  ;;  %v3565_v46 = vpop.f32.mrb[17].mxu1  ;;  %v1200_v45 = vadd.f32 %v4641_v8, %v4592_v44 }
0x1726   :  { %4018 = vtanh.f32 %v1390_v23  ;;  %v3208_v50 = vmul.f32 -1.442695, %v1390_v23 }
0x1728   :  { %4020 = vpow2.f32 %v3208_v50 }
0x1730   :  { %v4019_v47 = vpop.eup %4018 }
0x1731   :  { %1400 = vrot.lane.b32.xlu1 %v4019_v47, %s4265_s20 }
0x1732   :  { %v4021_v51 = vpop.eup %4020 }
0x1733   :  { %v1394_v38 = vadd.f32 1.0, %v4021_v51 }
0x1735   :  { %4022 = vrcp.f32 %v1394_v38 }
0x173f   :  { %v4023_v52 = vpop.eup %4022 }
0x1740   :  { %v1398_v55 = vmul.f32 %v4023_v52, %v1306_v14 }
0x1748   :  { %v1063_v48 = vpop.permute.xlu0 %1062 }
0x1749   :  { %1065 = vst.msk [vmem:[#allocation2 + $0x38] sm:$0xff] %vm248_vm2, %v1063_v48 }
0x1750   :  { %v1073_v49 = vld [vmem:[#allocation2 + $0x38] sm:$0xff] }
0x1751   :  { %3542 = vmatmul.mubr.msk.f32.gmra.mrb[16].mxu0 %vm248_vm2, %v1073_v49 }
0x1752   :  { %3574 = vmatprep.mubr.msk.f32.mxu0 %vm4263_vm1, %v4264_v16 }
0x17a3   :  { %v1401_v53 = vpop.permute.xlu1 %1400 }
0x17a4   :  { %v1403_v54 = vmul.f32 %v4023_v52, %v1401_v53 }
0x17a6   :  { %1405 = vrot.lane.b32.xlu1 %v1403_v54, %s4266_s3 }
0x1818   :  { %v1406_v57 = vpop.permute.xlu1 %1405 }
0x1819   :  { %v1408_v19 = vadd.f32 %v1406_v57, %v1398_v55 }
0x181b   :  { %4024 = vtanh.f32 %v1408_v19 }
0x1824   :  { %v4669_v59 = vpop.f32.mrb[16].mxu0 }
0x1825   :  { %v4025_v60 = vpop.eup %4024  ;;  %v4671_v61 = vpop.f32.mrb[17].mxu0 }
0x1826   :  { %1411 = vrot.lane.b32.xlu1 %v4025_v60, %s4265_s20 }
0x1898   :  { %v1412_v62 = vpop.permute.xlu1 %1411 }
0x1899   :  { %v1414_v63 = vmul.f32 %v4023_v52, %v1412_v62 }
0x189b   :  { %1416 = vrot.lane.b32.xlu1 %v1414_v63, %s4266_s3  ;;  %v1205_v63 = vadd.f32 %v4590_v43, %v4641_v8 }
0x190d   :  { %v1417_v0 = vpop.permute.xlu1 %1416 }
0x190e   :  { %1419 = vst.msk [vmem:[#allocation2 + $0x8] sm:$0xff] %vm248_vm2, %v1417_v0  ;;  %3575 = vmatmul.mubr.msk.f32.vlgmr.msra.gmra.mrb[18].mxu0 %vm248_vm2, %v1417_v0 }
0x190f   :  { %3846 = vmatpush3.bf16.msra.mxu0 %v4605_v56  ;;  %3596 = vmatprep.mubr.msk.f32.mxu0 %vm4263_vm1, %v4264_v16 }
0x1910   :  { %3847 = vmatprep.subr.bf16.mxu0 %v4262_v10 }
0x1913   :  { %3849 = vmatpush3.bf16.msra.mxu0 %v4615_v58 }
0x1914   :  { %3856 = vmatprep.subr.bf16.mxu0 %v4262_v10 }
0x19e1   :  { %v1488_v2 = vpop.f32.mrb[18].mxu0 }
0x19e2   :  { %v1492_v3 = vadd.f32 %v1488_v2, %v1190_v1  ;;  %v3576_v4 = vpop.f32.mrb[19].mxu0 }
0x19e4   :  { %4026 = vtanh.f32 %v1492_v3  ;;  %v3210_v6 = vmul.f32 -1.442695, %v1492_v3 }
0x19e6   :  { %4028 = vpow2.f32 %v3210_v6 }
0x19ee   :  { %v4027_v5 = vpop.eup %4026 }
0x19ef   :  { %1502 = vrot.lane.b32.xlu0 %v4027_v5, %s4265_s20 }
0x19f0   :  { %v4029_v15 = vpop.eup %4028 }
0x19f1   :  { %v1496_v7 = vadd.f32 1.0, %v4029_v15 }
0x19f3   :  { %4030 = vrcp.f32 %v1496_v7 }
0x19fd   :  { %v4031_v21 = vpop.eup %4030 }
0x19fe   :  { %v1500_v17 = vmul.f32 %v4031_v21, %v1408_v19 }
0x1a61   :  { %v1503_v22 = vpop.permute.xlu0 %1502 }
0x1a62   :  { %v1505_v9 = vmul.f32 %v4031_v21, %v1503_v22  ;;  %v2040_v22 = vld [vmem:[#allocation6] sm:$0xff] }
0x1a64   :  { %1507 = vrot.lane.b32.xlu1 %v1505_v9, %s4266_s3  ;;  %v2041_v9 = vld [vmem:[#allocation6 + $0x8] sm:$0xff] }
0x1ad6   :  { %v1508_v11 = vpop.permute.xlu1 %1507 }
0x1ad7   :  { %v1510_v42 = vadd.f32 %v1508_v11, %v1500_v17  ;;  %v3868_v17 = vpack.c.bf16 %v2041_v9, %v2040_v22 }
0x1ad9   :  { %4032 = vtanh.f32 %v1510_v42 }
0x1ae3   :  { %v4033_v12 = vpop.eup %4032 }
0x1ae4   :  { %1513 = vrot.lane.b32.xlu0 %v4033_v12, %s4265_s20 }
0x1b56   :  { %v1514_v13 = vpop.permute.xlu0 %1513 }
0x1b57   :  { %v1516_v14 = vmul.f32 %v4031_v21, %v1514_v13  ;;  %v2042_v13 = vld [vmem:[#allocation6 + $0x10] sm:$0xff] }
0x1b59   :  { %1518 = vrot.lane.b32.xlu1 %v1516_v14, %s4266_s3  ;;  %v2043_v14 = vld [vmem:[#allocation6 + $0x18] sm:$0xff] }
0x1bcb   :  { %v1519_v18 = vpop.permute.xlu1 %1518 }
0x1bcc   :  { %1521 = vst.msk [vmem:[#allocation2 + $0x10] sm:$0xff] %vm248_vm2, %v1519_v18  ;;  %3586 = vmatmul.mubr.msk.f32.vlgmr.msra.gmra.mrb[18].mxu1 %vm248_vm2, %v1519_v18  ;;  %v3872_v18 = vpack.c.bf16 %v2043_v14, %v2042_v13 }
0x1bcd   :  { %3852 = vmatpush3.bf16.msra.mxu1 %v4605_v56  ;;  %3607 = vmatprep.mubr.msk.f32.mxu1 %vm4263_vm1, %v4264_v16 }
0x1bce   :  { %3853 = vmatprep.subr.bf16.mxu1 %v4262_v10 }
0x1bd1   :  { %3855 = vmatpush3.bf16.msra.mxu1 %v4615_v58 }
0x1bd2   :  { %3862 = vmatprep.subr.bf16.mxu1 %v4262_v10 }
0x1c9f   :  { %v1590_v24 = vpop.f32.mrb[18].mxu1 }
0x1ca0   :  { %v1594_v25 = vadd.f32 %v1590_v24, %v1195_v20  ;;  %v3587_v26 = vpop.f32.mrb[19].mxu1  ;;  %v2032_v24 = vld [vmem:[#allocation2] sm:$0xff] }
0x1ca1   :  { %v2034_v26 = vld [vmem:[#allocation2 + $0x10] sm:$0xff] }
0x1ca2   :  { %4034 = vtanh.f32 %v1594_v25  ;;  %v3212_v28 = vmul.f32 -1.442695, %v1594_v25  ;;  %v2033_v25 = vld [vmem:[#allocation2 + $0x8] sm:$0xff] }
0x1ca4   :  { %4036 = vpow2.f32 %v3212_v28 }
0x1cac   :  { %v4035_v27 = vpop.eup %4034 }
0x1cad   :  { %1604 = vrot.lane.b32.xlu0 %v4035_v27, %s4265_s20 }
0x1cae   :  { %v4037_v29 = vpop.eup %4036 }
0x1caf   :  { %v1598_v30 = vadd.f32 1.0, %v4037_v29 }
0x1cb1   :  { %4038 = vrcp.f32 %v1598_v30  ;;  %v1210_v30 = vadd.f32 %v4641_v8, %v4671_v61 }
0x1cbb   :  { %v4039_v31 = vpop.eup %4038 }
0x1cbc   :  { %v1602_v34 = vmul.f32 %v4039_v31, %v1510_v42 }
0x1d1f   :  { %v1605_v32 = vpop.permute.xlu0 %1604 }
0x1d20   :  { %v1607_v33 = vmul.f32 %v4039_v31, %v1605_v32 }
0x1d22   :  { %1609 = vrot.lane.b32.xlu1 %v1607_v33, %s4266_s3 }
0x1d94   :  { %v1610_v35 = vpop.permute.xlu1 %1609 }
0x1d95   :  { %v1612_v40 = vadd.f32 %v1610_v35, %v1602_v34 }
0x1d97   :  { %4040 = vtanh.f32 %v1612_v40 }
0x1da1   :  { %v4041_v36 = vpop.eup %4040 }
0x1da2   :  { %1615 = vrot.lane.b32.xlu0 %v4041_v36, %s4265_s20 }
0x1e14   :  { %v1616_v37 = vpop.permute.xlu0 %1615 }
0x1e15   :  { %v1618_v39 = vmul.f32 %v4039_v31, %v1616_v37 }
0x1e17   :  { %1620 = vrot.lane.b32.xlu1 %v1618_v39, %s4266_s3 }
0x1e89   :  { %v1621_v41 = vpop.permute.xlu1 %1620 }
0x1e8a   :  { %1623 = vst.msk [vmem:[#allocation2 + $0x18] sm:$0xff] %vm248_vm2, %v1621_v41  ;;  %3597 = vmatmul.mubr.msk.f32.vlgmr.msra.gmra.mrb[20].mxu0 %vm248_vm2, %v1621_v41 }
0x1e8b   :  { %3858 = vmatpush3.bf16.msra.mxu0 %v4605_v56  ;;  %3618 = vmatprep.mubr.msk.f32.mxu0 %vm4263_vm1, %v4264_v16 }
0x1e8c   :  { %3859 = vmatprep.subr.bf16.mxu0 %v4262_v10 }
0x1e8f   :  { %3861 = vmatpush3.bf16.msra.mxu0 %v4615_v58 }
0x1e90   :  { %3869 = vmatprep.subr.bf16.mxu0 %v3868_v17 }
0x1e91   :  { %v2035_v27 = vld [vmem:[#allocation2 + $0x18] sm:$0xff] }
0x1f5d   :  { %v1692_v23 = vpop.f32.mrb[20].mxu0 }
0x1f5e   :  { %v1696_v46 = vadd.f32 %v1692_v23, %v1200_v45  ;;  %v3598_v47 = vpop.f32.mrb[21].mxu0 }
0x1f60   :  { %4042 = vtanh.f32 %v1696_v46  ;;  %v3214_v49 = vmul.f32 -1.442695, %v1696_v46 }
0x1f62   :  { %4044 = vpow2.f32 %v3214_v49 }
0x1f6a   :  { %v4043_v48 = vpop.eup %4042 }
0x1f6b   :  { %1706 = vrot.lane.b32.xlu0 %v4043_v48, %s4265_s20 }
0x1f6c   :  { %v4045_v50 = vpop.eup %4044 }
0x1f6d   :  { %v1700_v51 = vadd.f32 1.0, %v4045_v50 }
0x1f6f   :  { %4046 = vrcp.f32 %v1700_v51 }
0x1f79   :  { %v4047_v38 = vpop.eup %4046 }
0x1f7a   :  { %v1704_v54 = vmul.f32 %v4047_v38, %v1612_v40 }
0x1fdd   :  { %v1707_v52 = vpop.permute.xlu0 %1706 }
0x1fde   :  { %v1709_v53 = vmul.f32 %v4047_v38, %v1707_v52  ;;  %v2044_v52 = vld [vmem:[#allocation8] sm:$0xff] }
0x1fe0   :  { %1711 = vrot.lane.b32.xlu1 %v1709_v53, %s4266_s3  ;;  %v2045_v53 = vld [vmem:[#allocation8 + $0x8] sm:$0xff] }
0x2052   :  { %v1712_v55 = vpop.permute.xlu1 %1711 }
0x2053   :  { %v1714_v44 = vadd.f32 %v1712_v55, %v1704_v54  ;;  %v4757_v54 = vpack.c.bf16 %v2045_v53, %v2044_v52  ;;  %v2046_v55 = vld [vmem:[#allocation8 + $0x10] sm:$0xff] }
0x2055   :  { %4048 = vtanh.f32 %v1714_v44 }
0x205f   :  { %v4049_v57 = vpop.eup %4048 }
0x2060   :  { %1717 = vrot.lane.b32.xlu0 %v4049_v57, %s4265_s20 }
0x20d2   :  { %v1718_v19 = vpop.permute.xlu0 %1717 }
0x20d3   :  { %v1720_v60 = vmul.f32 %v4047_v38, %v1718_v19 }
0x20d5   :  { %1722 = vrot.lane.b32.xlu1 %v1720_v60, %s4266_s3 }
0x2147   :  { %v1723_v62 = vpop.permute.xlu1 %1722 }
0x2148   :  { %1725 = vst.msk [vmem:[#allocation2 + $0x20] sm:$0xff] %vm248_vm2, %v1723_v62  ;;  %3608 = vmatmul.mubr.msk.f32.vlgmr.msra.gmra.mrb[20].mxu1 %vm248_vm2, %v1723_v62 }
0x2149   :  { %3864 = vmatpush3.bf16.msra.mxu1 %v4605_v56  ;;  %3629 = vmatprep.mubr.msk.f32.mxu1 %vm4263_vm1, %v4264_v16 }
0x214a   :  { %3865 = vmatprep.subr.bf16.mxu1 %v4262_v10 }
0x214d   :  { %3867 = vmatpush3.bf16.msra.mxu1 %v4615_v58 }
0x214e   :  { %3876 = vmatprep.subr.bf16.mxu1 %v4262_v10 }
0x214f   :  { %v2036_v28 = vld [vmem:[#allocation2 + $0x20] sm:$0xff] }
0x221b   :  { %v1794_v0 = vpop.f32.mrb[20].mxu1 }
0x221c   :  { %v1798_v1 = vadd.f32 %v1794_v0, %v1205_v63  ;;  %v3609_v2 = vpop.f32.mrb[21].mxu1  ;;  %v1215_v0 = vadd.f32 %v4669_v59, %v4641_v8 }
0x221e   :  { %4050 = vtanh.f32 %v1798_v1  ;;  %v3216_v56 = vmul.f32 -1.442695, %v1798_v1 }
0x2220   :  { %4052 = vpow2.f32 %v3216_v56  ;;  %v4787_v56 = vld [vmem:[%s4941_s9] ss:$0 sm:$0xff] }
0x2228   :  { %v4051_v3 = vpop.eup %4050 }
0x2229   :  { %1808 = vrot.lane.b32.xlu0 %v4051_v3, %s4265_s20 }
0x222a   :  { %v4053_v4 = vpop.eup %4052 }
0x222b   :  { %v1802_v5 = vadd.f32 1.0, %v4053_v4 }
0x222d   :  { %4054 = vrcp.f32 %v1802_v5 }
0x2237   :  { %v4055_v6 = vpop.eup %4054 }
0x2238   :  { %v1806_v7 = vmul.f32 %v4055_v6, %v1714_v44  ;;  %v2047_v44 = vld [vmem:[#allocation8 + $0x18] sm:$0xff] }
0x2239   :  { %v4761_v57 = vpack.c.bf16 %v2047_v44, %v2046_v55 }
0x229b   :  { %v1809_v15 = vpop.permute.xlu0 %1808 }
0x229c   :  { %v1811_v58 = vmul.f32 %v4055_v6, %v1809_v15 }
0x229e   :  { %1813 = vrot.lane.b32.xlu1 %v1811_v58, %s4266_s3 }
0x2310   :  { %v1814_v21 = vpop.permute.xlu1 %1813 }
0x2311   :  { %v1816_v43 = vadd.f32 %v1814_v21, %v1806_v7 }
0x2313   :  { %4056 = vtanh.f32 %v1816_v43 }
0x231d   :  { %v4057_v11 = vpop.eup %4056 }
0x231e   :  { %1819 = vrot.lane.b32.xlu0 %v4057_v11, %s4265_s20 }
0x2390   :  { %v1820_v42 = vpop.permute.xlu0 %1819 }
0x2391   :  { %v1822_v12 = vmul.f32 %v4055_v6, %v1820_v42 }
0x2393   :  { %1824 = vrot.lane.b32.xlu1 %v1822_v12, %s4266_s3 }
0x2405   :  { %v1825_v20 = vpop.permute.xlu1 %1824 }
0x2406   :  { %1827 = vst.msk [vmem:[#allocation2 + $0x28] sm:$0xff] %vm248_vm2, %v1825_v20  ;;  %3619 = vmatmul.mubr.msk.f32.vlgmr.msra.gmra.mrb[22].mxu0 %vm248_vm2, %v1825_v20 }
0x2407   :  { %3871 = vmatpush3.bf16.msra.mxu0 %v3868_v17  ;;  %3640 = vmatprep.mubr.msk.f32.mxu0 %vm248_vm2, %v2032_v24 }
0x2408   :  { %3873 = vmatprep.subr.bf16.mxu0 %v3872_v18 }
0x240b   :  { %3875 = vmatpush3.bf16.msra.mxu0 %v3872_v18 }
0x240c   :  { %3888 = vmatprep.subr.bf16.mxu0 %v4262_v10 }
0x240d   :  { %v2037_v29 = vld [vmem:[#allocation2 + $0x28] sm:$0xff] }
0x240e   :  { %3641 = vmatmul.mubr.msk.f32.vlgmr.msra.gmra.mrb[24].mxu0 %vm248_vm2, %v2033_v25 }
0x240f   :  { %3643 = vmatprep.mubr.msk.f32.mxu0 %vm248_vm2, %v2034_v26  ;;  %3890 = vmatpush3.bf16.msra.mxu0 %v4757_v54 }
0x2410   :  { %3891 = vmatprep.subr.bf16.mxu0 %v4262_v10 }
0x2412   :  { %3644 = vmatmul.mubr.msk.f32.gmra.mrb[26].mxu0 %vm248_vm2, %v2035_v27 }
0x2413   :  { %3646 = vmatprep.mubr.msk.f32.mxu0 %vm248_vm2, %v2036_v28  ;;  %3893 = vmatpush3.bf16.msra.mxu0 %v4761_v57 }
0x2414   :  { %3900 = vmatprep.subr.bf16.mxu0 %v4262_v10 }
0x2416   :  { %3647 = vmatmul.mubr.msk.f32.gmra.mrb[28].mxu0 %vm248_vm2, %v2037_v29 }
0x24d9   :  { %v1896_v31 = vpop.f32.mrb[22].mxu0 }
0x24da   :  { %v1900_v32 = vadd.f32 %v1896_v31, %v1210_v30  ;;  %v3620_v33 = vpop.f32.mrb[23].mxu0 }
0x24dc   :  { %4058 = vtanh.f32 %v1900_v32  ;;  %v3218_v45 = vmul.f32 -1.442695, %v1900_v32 }
0x24de   :  { %4060 = vpow2.f32 %v3218_v45 }
0x24e1   :  { %v4741_v34 = vpop.f32.mrb[24].mxu0 }
0x24e2   :  { %v2145_v35 = vpop.f32.mrb[25].mxu0 }
0x24e3   :  { %v2146_v4 = vadd.f32 %v4787_v56, %v2145_v35 }
0x24e5   :  { %v4743_v40 = vpop.f32.mrb[26].mxu0 }
0x24e6   :  { %v4059_v36 = vpop.eup %4058  ;;  %v4745_v37 = vpop.f32.mrb[27].mxu0 }
0x24e7   :  { %1910 = vrot.lane.b32.xlu0 %v4059_v36, %s4265_s20  ;;  %v2151_v36 = vadd.f32 %v4741_v34, %v4787_v56 }
0x24e8   :  { %v4061_v61 = vpop.eup %4060 }
0x24e9   :  { %v4748_v39 = vpop.f32.mrb[28].mxu0  ;;  %v1904_v23 = vadd.f32 1.0, %v4061_v61 }
0x24ea   :  { %v4750_v41 = vpop.f32.mrb[29].mxu0 }
0x24eb   :  { %4062 = vrcp.f32 %v1904_v23 }
0x24f5   :  { %v4063_v46 = vpop.eup %4062 }
0x24f6   :  { %v1908_v49 = vmul.f32 %v4063_v46, %v1816_v43 }
0x2559   :  { %v1911_v47 = vpop.permute.xlu0 %1910 }
0x255a   :  { %v1913_v48 = vmul.f32 %v4063_v46, %v1911_v47 }
0x255c   :  { %1915 = vrot.lane.b32.xlu1 %v1913_v48, %s4266_s3 }
0x25ce   :  { %v1916_v50 = vpop.permute.xlu1 %1915 }
0x25cf   :  { %v4753_v51 = vadd.f32 %v1916_v50, %v1908_v49 }
0x25d1   :  { %4064 = vtanh.f32 %v4753_v51 }
0x25db   :  { %v4065_v38 = vpop.eup %4064 }
0x25dc   :  { %1921 = vrot.lane.b32.xlu0 %v4065_v38, %s4265_s20 }
0x264e   :  { %v1922_v19 = vpop.permute.xlu0 %1921 }
0x264f   :  { %v1924_v60 = vmul.f32 %v4063_v46, %v1922_v19 }
0x2651   :  { %1926 = vrot.lane.b32.xlu1 %v1924_v60, %s4266_s3 }
0x26c3   :  { %v1927_v62 = vpop.permute.xlu1 %1926 }
0x26c4   :  { %1929 = vst.msk [vmem:[#allocation2 + $0x30] sm:$0xff] %vm248_vm2, %v1927_v62  ;;  %3630 = vmatmul.mubr.msk.f32.vlgmr.msra.gmra.mrb[22].mxu1 %vm248_vm2, %v1927_v62 }
0x26c5   :  { %3878 = vmatpush3.bf16.msra.mxu1 %v4757_v54  ;;  %3660 = vmatprep.mubr.msk.f32.mxu1 %vm4263_vm1, %v4264_v16 }
0x26c6   :  { %3879 = vmatprep.subr.bf16.mxu1 %v4262_v10 }
0x26c9   :  { %3881 = vmatpush3.bf16.msra.mxu1 %v4761_v57 }
0x26ca   :  { %3882 = vmatprep.subr.bf16.mxu1 %v4262_v10 }
0x26cb   :  { %v2038_v63 = vld [vmem:[#allocation2 + $0x30] sm:$0xff] }
0x26cc   :  { %3661 = vmatmul.mubr.f32.vlgmr.msra.gmra.mrb[24].mxu1 %v4264_v16  ;;  %3649 = vmatprep.mubr.msk.f32.mxu0 %vm248_vm2, %v2038_v63 }
0x26cd   :  { %3884 = vmatpush3.bf16.msra.mxu1 %v4757_v54  ;;  %3671 = vmatprep.mubr.msk.f32.mxu1 %vm4263_vm1, %v4264_v16 }
0x26ce   :  { %3885 = vmatprep.subr.bf16.mxu1 %v4262_v10 }
0x26d1   :  { %3887 = vmatpush3.bf16.msra.mxu1 %v4761_v57 }
0x26d2   :  { %3894 = vmatprep.subr.bf16.mxu1 %v4262_v10 }
0x2797   :  { %v1998_v1 = vpop.f32.mrb[22].mxu1 }
0x2798   :  { %v2002_v2 = vadd.f32 %v1998_v1, %v1215_v0  ;;  %v3631_v3 = vpop.f32.mrb[23].mxu1 }
0x279a   :  { %v3220_v13 = vmul.f32 -1.442695, %v2002_v2 }
0x279f   :  { %v2250_v5 = vpop.f32.mrb[24].mxu1 }
0x27a0   :  { %v2254_v6 = vadd.f32 %v2250_v5, %v2146_v4  ;;  %v3662_v15 = vpop.f32.mrb[25].mxu1 }
0x27a2   :  { %4066 = vtanh.f32 %v2254_v6  ;;  %v3230_v7 = vmul.f32 -1.442695, %v2254_v6 }
0x27a4   :  { %4068 = vpow2.f32 %v3230_v7 }
0x27ac   :  { %v4067_v58 = vpop.eup %4066 }
0x27ad   :  { %2264 = vrot.lane.b32.xlu0 %v4067_v58, %s4265_s20 }
0x27ae   :  { %v4069_v8 = vpop.eup %4068 }
0x27af   :  { %v2258_v59 = vadd.f32 1.0, %v4069_v8 }
0x27b1   :  { %4070 = vrcp.f32 %v2258_v59 }
0x27bb   :  { %v4071_v21 = vpop.eup %4070 }
0x27bc   :  { %v2262_v9 = vmul.f32 0.0, %v4071_v21 }
0x281f   :  { %v2265_v43 = vpop.permute.xlu0 %2264 }
0x2820   :  { %v2267_v22 = vmul.f32 %v4071_v21, %v2265_v43 }
0x2822   :  { %2269 = vrot.lane.b32.xlu1 %v2267_v22, %s4266_s3 }
0x2894   :  { %v2270_v17 = vpop.permute.xlu1 %2269 }
0x2895   :  { %v2272_v11 = vadd.f32 %v2270_v17, %v2262_v9 }
0x2897   :  { %4072 = vtanh.f32 %v2272_v11 }
0x2898   :  { %4074 = vtanh.f32 %v2002_v2  ;;  %v2156_v2 = vadd.f32 %v4787_v56, %v4745_v37 }
0x2899   :  { %4076 = vpow2.f32 %v3220_v13 }
0x28a1   :  { %v4073_v42 = vpop.eup %4072 }
0x28a2   :  { %2275 = vrot.lane.b32.xlu0 %v4073_v42, %s4265_s20  ;;  %v4075_v12 = vpop.eup %4074 }
0x28a3   :  { %v4077_v14 = vpop.eup %4076 }
0x28a4   :  { %v2006_v18 = vadd.f32 1.0, %v4077_v14 }
0x28a6   :  { %2012 = vrot.lane.b32.xlu0 %v4075_v12, %s4265_s20  ;;  %4078 = vrcp.f32 %v2006_v18  ;;  %v2161_v12 = vadd.f32 %v4743_v40, %v4787_v56 }
0x28b0   :  { %v4079_v25 = vpop.eup %4078 }
0x28b1   :  { %v2010_v29 = vmul.f32 %v4079_v25, %v4753_v51 }
0x2914   :  { %v2276_v20 = vpop.permute.xlu0 %2275 }
0x2915   :  { %v2278_v24 = vmul.f32 %v4071_v21, %v2276_v20 }
0x2917   :  { %2280 = vrot.lane.b32.xlu1 %v2278_v24, %s4266_s3 }
0x2918   :  { %v2013_v26 = vpop.permute.xlu0 %2012 }
0x2919   :  { %v2015_v27 = vmul.f32 %v4079_v25, %v2013_v26 }
0x291b   :  { %2017 = vrot.lane.b32.xlu0 %v2015_v27, %s4266_s3 }
0x2989   :  { %v2281_v28 = vpop.permute.xlu1 %2280 }
0x298a   :  { %2283 = vst.msk [vmem:[#allocation2] sm:$0xff] %vm248_vm2, %v2281_v28  ;;  %3672 = vmatmul.mubr.msk.f32.vlgmr.msra.gmra.mrb[26].mxu1 %vm248_vm2, %v2281_v28 }
0x298b   :  { %3896 = vmatpush3.bf16.msra.mxu1 %v4757_v54  ;;  %3693 = vmatprep.mubr.msk.f32.mxu1 %vm4263_vm1, %v4264_v16 }
0x298c   :  { %3897 = vmatprep.subr.bf16.mxu1 %v4262_v10 }
0x298d   :  { %v2018_v30 = vpop.permute.xlu0 %2017 }
0x298e   :  { %v2020_v31 = vadd.f32 %v2018_v30, %v2010_v29 }
0x298f   :  { %3899 = vmatpush3.bf16.msra.mxu1 %v4761_v57 }
0x2990   :  { %4080 = vtanh.f32 %v2020_v31  ;;  %3906 = vmatprep.subr.bf16.mxu1 %v4262_v10 }
0x299a   :  { %v4081_v32 = vpop.eup %4080 }
0x299b   :  { %2023 = vrot.lane.b32.xlu0 %v4081_v32, %s4265_s20 }
0x2a0d   :  { %v2024_v33 = vpop.permute.xlu0 %2023 }
0x2a0e   :  { %v2026_v35 = vmul.f32 %v4079_v25, %v2024_v33 }
0x2a10   :  { %2028 = vrot.lane.b32.xlu0 %v2026_v35, %s4266_s3 }
0x2a5d   :  { %v2352_v45 = vpop.f32.mrb[26].mxu1 }
0x2a5e   :  { %v2356_v61 = vadd.f32 %v2352_v45, %v2151_v36  ;;  %v3673_v23 = vpop.f32.mrb[27].mxu1  ;;  %v2166_v45 = vadd.f32 %v4787_v56, %v4750_v41 }
0x2a60   :  { %4082 = vtanh.f32 %v2356_v61  ;;  %v3232_v49 = vmul.f32 -1.442695, %v2356_v61 }
0x2a62   :  { %4084 = vpow2.f32 %v3232_v49 }
0x2a6a   :  { %v4083_v46 = vpop.eup %4082 }
0x2a6b   :  { %2366 = vrot.lane.b32.xlu1 %v4083_v46, %s4265_s20 }
0x2a6c   :  { %v4085_v50 = vpop.eup %4084 }
0x2a6d   :  { %v2360_v34 = vadd.f32 1.0, %v4085_v50 }
0x2a6f   :  { %4086 = vrcp.f32 %v2360_v34 }
0x2a79   :  { %v4087_v51 = vpop.eup %4086 }
0x2a7a   :  { %v2364_v53 = vmul.f32 %v4087_v51, %v2272_v11 }
0x2a82   :  { %v2029_v47 = vpop.permute.xlu0 %2028 }
0x2a83   :  { %2031 = vst.msk [vmem:[#allocation2 + $0x38] sm:$0xff] %vm248_vm2, %v2029_v47 }
0x2a8a   :  { %v2039_v48 = vld [vmem:[#allocation2 + $0x38] sm:$0xff] }
0x2a8b   :  { %3650 = vmatmul.mubr.msk.f32.gmra.mrb[30].mxu0 %vm248_vm2, %v2039_v48 }
0x2a8c   :  { %3682 = vmatprep.mubr.msk.f32.mxu0 %vm4263_vm1, %v4264_v16 }
0x2add   :  { %v2367_v38 = vpop.permute.xlu1 %2366 }
0x2ade   :  { %v2369_v52 = vmul.f32 %v4087_v51, %v2367_v38 }
0x2ae0   :  { %2371 = vrot.lane.b32.xlu1 %v2369_v52, %s4266_s3 }
0x2b52   :  { %v2372_v55 = vpop.permute.xlu1 %2371 }
0x2b53   :  { %v2374_v44 = vadd.f32 %v2372_v55, %v2364_v53 }
0x2b55   :  { %4088 = vtanh.f32 %v2374_v44 }
0x2b5e   :  { %v4815_v19 = vpop.f32.mrb[30].mxu0 }
0x2b5f   :  { %v4089_v60 = vpop.eup %4088  ;;  %v4817_v62 = vpop.f32.mrb[31].mxu0 }
0x2b60   :  { %2377 = vrot.lane.b32.xlu1 %v4089_v60, %s4265_s20 }
0x2bd2   :  { %v2378_v63 = vpop.permute.xlu1 %2377 }
0x2bd3   :  { %v2380_v0 = vmul.f32 %v4087_v51, %v2378_v63 }
0x2bd5   :  { %2382 = vrot.lane.b32.xlu1 %v2380_v0, %s4266_s3  ;;  %v2171_v0 = vadd.f32 %v4748_v39, %v4787_v56 }
0x2c47   :  { %v2383_v1 = vpop.permute.xlu1 %2382 }
0x2c48   :  { %2385 = vst.msk [vmem:[#allocation2 + $0x8] sm:$0xff] %vm248_vm2, %v2383_v1  ;;  %3683 = vmatmul.mubr.msk.f32.vlgmr.msra.gmra.mrb[32].mxu0 %vm248_vm2, %v2383_v1 }
0x2c49   :  { %3902 = vmatpush3.bf16.msra.mxu0 %v4757_v54  ;;  %3704 = vmatprep.mubr.msk.f32.mxu0 %vm4263_vm1, %v4264_v16 }
0x2c4a   :  { %3903 = vmatprep.subr.bf16.mxu0 %v4262_v10 }
0x2c4d   :  { %3905 = vmatpush3.bf16.msra.mxu0 %v4761_v57 }
0x2c4e   :  { %3912 = vmatprep.subr.bf16.mxu0 %v4262_v10 }
0x2d1b   :  { %v2454_v3 = vpop.f32.mrb[32].mxu0 }
0x2d1c   :  { %v2458_v4 = vadd.f32 %v2454_v3, %v2156_v2  ;;  %v3684_v5 = vpop.f32.mrb[33].mxu0 }
0x2d1e   :  { %4090 = vtanh.f32 %v2458_v4  ;;  %v3234_v15 = vmul.f32 -1.442695, %v2458_v4 }
0x2d20   :  { %4092 = vpow2.f32 %v3234_v15 }
0x2d28   :  { %v4091_v6 = vpop.eup %4090 }
0x2d29   :  { %2468 = vrot.lane.b32.xlu0 %v4091_v6, %s4265_s20 }
0x2d2a   :  { %v4093_v58 = vpop.eup %4092 }
0x2d2b   :  { %v2462_v7 = vadd.f32 1.0, %v4093_v58 }
0x2d2d   :  { %4094 = vrcp.f32 %v2462_v7  ;;  %v3006_v7 = vld [vmem:[#allocation9] sm:$0xff] }
0x2d37   :  { %v4095_v8 = vpop.eup %4094 }
0x2d38   :  { %v2466_v43 = vmul.f32 %v4095_v8, %v2374_v44 }
0x2d9b   :  { %v2469_v59 = vpop.permute.xlu0 %2468 }
0x2d9c   :  { %v2471_v21 = vmul.f32 %v4095_v8, %v2469_v59 }
0x2d9e   :  { %2473 = vrot.lane.b32.xlu1 %v2471_v21, %s4266_s3 }
0x2e10   :  { %v2474_v22 = vpop.permute.xlu1 %2473 }
0x2e11   :  { %v2476_v37 = vadd.f32 %v2474_v22, %v2466_v43 }
0x2e13   :  { %4096 = vtanh.f32 %v2476_v37 }
0x2e1d   :  { %v4097_v9 = vpop.eup %4096 }
0x2e1e   :  { %2479 = vrot.lane.b32.xlu0 %v4097_v9, %s4265_s20  ;;  %v3009_v9 = vld [vmem:[#allocation9 + $0x18] sm:$0xff] }
0x2e90   :  { %v2480_v17 = vpop.permute.xlu0 %2479 }
0x2e91   :  { %v2482_v11 = vmul.f32 %v4095_v8, %v2480_v17  ;;  %v3007_v8 = vld [vmem:[#allocation9 + $0x8] sm:$0xff] }
0x2e92   :  { %v3924_v59 = vpack.c.bf16 %v3007_v8, %v3006_v7 }
0x2e93   :  { %2484 = vrot.lane.b32.xlu1 %v2482_v11, %s4266_s3 }
0x2f05   :  { %v2485_v42 = vpop.permute.xlu1 %2484 }
0x2f06   :  { %2487 = vst.msk [vmem:[#allocation2 + $0x10] sm:$0xff] %vm248_vm2, %v2485_v42  ;;  %3694 = vmatmul.mubr.msk.f32.vlgmr.msra.gmra.mrb[28].mxu1 %vm248_vm2, %v2485_v42  ;;  %v2998_v42 = vld [vmem:[#allocation2] sm:$0xff] }
0x2f07   :  { %3908 = vmatpush3.bf16.msra.mxu1 %v4757_v54  ;;  %3715 = vmatprep.mubr.msk.f32.mxu1 %vm4263_vm1, %v4264_v16 }
0x2f08   :  { %3909 = vmatprep.subr.bf16.mxu1 %v4262_v10 }
0x2f0b   :  { %3911 = vmatpush3.bf16.msra.mxu1 %v4761_v57 }
0x2f0c   :  { %3918 = vmatprep.subr.bf16.mxu1 %v4262_v10 }
0x2fd9   :  { %v2556_v13 = vpop.f32.mrb[28].mxu1 }
0x2fda   :  { %v2560_v14 = vadd.f32 %v2556_v13, %v2161_v12  ;;  %v3695_v18 = vpop.f32.mrb[29].mxu1  ;;  %v2999_v12 = vld [vmem:[#allocation2 + $0x8] sm:$0xff]  ;;  %v3000_v13 = vld [vmem:[#allocation2 + $0x10] sm:$0xff] }
0x2fdc   :  { %4098 = vtanh.f32 %v2560_v14  ;;  %v3236_v24 = vmul.f32 -1.442695, %v2560_v14 }
0x2fde   :  { %4100 = vpow2.f32 %v3236_v24  ;;  %v2176_v24 = vadd.f32 %v4787_v56, %v4817_v62 }
0x2fe6   :  { %v4099_v20 = vpop.eup %4098 }
0x2fe7   :  { %2570 = vrot.lane.b32.xlu0 %v4099_v20, %s4265_s20 }
0x2fe8   :  { %v4101_v25 = vpop.eup %4100 }
0x2fe9   :  { %v2564_v26 = vadd.f32 1.0, %v4101_v25 }
0x2feb   :  { %4102 = vrcp.f32 %v2564_v26 }
0x2ff5   :  { %v4103_v27 = vpop.eup %4102 }
0x2ff6   :  { %v2568_v30 = vmul.f32 %v4103_v27, %v2476_v37  ;;  %v3008_v37 = vld [vmem:[#allocation9 + $0x10] sm:$0xff] }
0x2ff7   :  { %v3928_v17 = vpack.c.bf16 %v3009_v9, %v3008_v37 }
0x3059   :  { %v2571_v28 = vpop.permute.xlu0 %2570 }
0x305a   :  { %v2573_v29 = vmul.f32 %v4103_v27, %v2571_v28  ;;  %v4891_v28 = vld [vmem:[%s4943_s11] ss:$0 sm:$0xff]  ;;  %s4267_s11 = smov [#allocation11]  }
0x305b   :  { %s3159_s23 = sshll.u32 %s4267_s11, 4  ;;  %s3160_s23 = int_to_ptr.vmem [resolvable:$true] %s3159_s23 }
0x305c   :  { %2575 = vrot.lane.b32.xlu1 %v2573_v29, %s4266_s3  ;;  %p4231_p5 = scmp.lt.s32.totalorder %s3160_s23, %s3160_s23 }
0x30ce   :  { %v2576_v31 = vpop.permute.xlu1 %2575 }
0x30cf   :  { %v2578_v40 = vadd.f32 %v2576_v31, %v2568_v30 }
0x30d1   :  { %4104 = vtanh.f32 %v2578_v40 }
0x30db   :  { %v4105_v32 = vpop.eup %4104 }
0x30dc   :  { %2581 = vrot.lane.b32.xlu0 %v4105_v32, %s4265_s20 }
0x314e   :  { %v2582_v33 = vpop.permute.xlu0 %2581 }
0x314f   :  { %v2584_v35 = vmul.f32 %v4103_v27, %v2582_v33 }
0x3151   :  { %2586 = vrot.lane.b32.xlu1 %v2584_v35, %s4266_s3 }
0x31c3   :  { %v2587_v36 = vpop.permute.xlu1 %2586 }
0x31c4   :  { %2589 = vst.msk [vmem:[#allocation2 + $0x18] sm:$0xff] %vm248_vm2, %v2587_v36  ;;  %3705 = vmatmul.mubr.msk.f32.vlgmr.msra.gmra.mrb[34].mxu0 %vm248_vm2, %v2587_v36 }
0x31c5   :  { %3914 = vmatpush3.bf16.msra.mxu0 %v4757_v54  ;;  %3726 = vmatprep.mubr.msk.f32.mxu0 %vm4263_vm1, %v4264_v16 }
0x31c6   :  { %3915 = vmatprep.subr.bf16.mxu0 %v4262_v10 }
0x31c9   :  { %3917 = vmatpush3.bf16.msra.mxu0 %v4761_v57 }
0x31ca   :  { %3925 = vmatprep.subr.bf16.mxu0 %v3924_v59 }
0x31cb   :  { %v3001_v14 = vld [vmem:[#allocation2 + $0x18] sm:$0xff] }
0x3297   :  { %v2658_v61 = vpop.f32.mrb[34].mxu0 }
0x3298   :  { %v2662_v23 = vadd.f32 %v2658_v61, %v2166_v45  ;;  %v3706_v46 = vpop.f32.mrb[35].mxu0 }
0x329a   :  { %4106 = vtanh.f32 %v2662_v23  ;;  %v3238_v48 = vmul.f32 -1.442695, %v2662_v23 }
0x329c   :  { %4108 = vpow2.f32 %v3238_v48 }
0x32a4   :  { %v4107_v47 = vpop.eup %4106 }
0x32a5   :  { %2672 = vrot.lane.b32.xlu0 %v4107_v47, %s4265_s20 }
0x32a6   :  { %v4109_v49 = vpop.eup %4108 }
0x32a7   :  { %v2666_v50 = vadd.f32 1.0, %v4109_v49 }
0x32a9   :  { %4110 = vrcp.f32 %v2666_v50 }
0x32b3   :  { %v4111_v34 = vpop.eup %4110 }
0x32b4   :  { %v2670_v52 = vmul.f32 %v4111_v34, %v2578_v40 }
0x3317   :  { %v2673_v51 = vpop.permute.xlu0 %2672 }
0x3318   :  { %v2675_v38 = vmul.f32 %v4111_v34, %v2673_v51 }
0x331a   :  { %2677 = vrot.lane.b32.xlu1 %v2675_v38, %s4266_s3 }
0x338c   :  { %v2678_v53 = vpop.permute.xlu1 %2677 }
0x338d   :  { %v2680_v41 = vadd.f32 %v2678_v53, %v2670_v52 }
0x338f   :  { %4112 = vtanh.f32 %v2680_v41 }
0x3399   :  { %v4113_v55 = vpop.eup %4112 }
0x339a   :  { %2683 = vrot.lane.b32.xlu0 %v4113_v55, %s4265_s20 }
0x340c   :  { %v2684_v44 = vpop.permute.xlu0 %2683 }
0x340d   :  { %v2686_v60 = vmul.f32 %v4111_v34, %v2684_v44 }
0x340f   :  { %2688 = vrot.lane.b32.xlu1 %v2686_v60, %s4266_s3 }
0x3481   :  { %v2689_v63 = vpop.permute.xlu1 %2688 }
0x3482   :  { %2691 = vst.msk [vmem:[#allocation2 + $0x20] sm:$0xff] %vm248_vm2, %v2689_v63  ;;  %3716 = vmatmul.mubr.msk.f32.vlgmr.msra.gmra.mrb[30].mxu1 %vm248_vm2, %v2689_v63 }
0x3483   :  { %3920 = vmatpush3.bf16.msra.mxu1 %v4757_v54  ;;  %3737 = vmatprep.mubr.msk.f32.mxu1 %vm4263_vm1, %v4264_v16 }
0x3484   :  { %3921 = vmatprep.subr.bf16.mxu1 %v4262_v10 }
0x3487   :  { %3923 = vmatpush3.bf16.msra.mxu1 %v4761_v57 }
0x3489   :  { %v3002_v18 = vld [vmem:[#allocation2 + $0x20] sm:$0xff] }
0x3555   :  { %v2760_v1 = vpop.f32.mrb[30].mxu1 }
0x3556   :  { %v2764_v2 = vadd.f32 %v2760_v1, %v2171_v0  ;;  %v3717_v3 = vpop.f32.mrb[31].mxu1  ;;  %v2181_v0 = vadd.f32 %v4815_v19, %v4787_v56 }
0x3558   :  { %4114 = vtanh.f32 %v2764_v2  ;;  %v3240_v5 = vmul.f32 -1.442695, %v2764_v2 }
0x355a   :  { %4116 = vpow2.f32 %v3240_v5 }
0x3562   :  { %v4115_v4 = vpop.eup %4114 }
0x3563   :  { %2774 = vrot.lane.b32.xlu0 %v4115_v4, %s4265_s20 }
0x3564   :  { %v4117_v54 = vpop.eup %4116 }
0x3565   :  { %v2768_v6 = vadd.f32 1.0, %v4117_v54 }
0x3567   :  { %4118 = vrcp.f32 %v2768_v6 }
0x3571   :  { %v4119_v16 = vpop.eup %4118 }
0x3572   :  { %v2772_v57 = vmul.f32 %v4119_v16, %v2680_v41 }
0x35d5   :  { %v2775_v15 = vpop.permute.xlu0 %2774 }
0x35d6   :  { %v2777_v10 = vmul.f32 %v4119_v16, %v2775_v15 }
0x35d8   :  { %2779 = vrot.lane.b32.xlu1 %v2777_v10, %s4266_s3 }
0x364a   :  { %v2780_v58 = vpop.permute.xlu1 %2779 }
0x364b   :  { %v4873_v39 = vadd.f32 %v2780_v58, %v2772_v57 }
0x364d   :  { %4120 = vtanh.f32 %v4873_v39 }
0x3657   :  { %v4121_v21 = vpop.eup %4120 }
0x3658   :  { %2785 = vrot.lane.b32.xlu0 %v4121_v21, %s4265_s20 }
0x36ca   :  { %v2786_v43 = vpop.permute.xlu0 %2785 }
0x36cb   :  { %v2788_v22 = vmul.f32 %v4119_v16, %v2786_v43 }
0x36cd   :  { %2790 = vrot.lane.b32.xlu1 %v2788_v22, %s4266_s3 }
0x373f   :  { %v2791_v11 = vpop.permute.xlu1 %2790 }
0x3740   :  { %2793 = vst.msk [vmem:[#allocation2 + $0x28] sm:$0xff] %vm248_vm2, %v2791_v11  ;;  %3727 = vmatmul.mubr.msk.f32.vlgmr.msra.gmra.mrb[36].mxu0 %vm248_vm2, %v2791_v11 }
0x3741   :  { %3927 = vmatpush3.bf16.msra.mxu0 %v3924_v59  ;;  %3748 = vmatprep.mubr.msk.f32.mxu0 %vm248_vm2, %v2998_v42 }
0x3742   :  { %3929 = vmatprep.subr.bf16.mxu0 %v3928_v17 }
0x3745   :  { %3931 = vmatpush3.bf16.msra.mxu0 %v3928_v17 }
0x3747   :  { %v3003_v20 = vld [vmem:[#allocation2 + $0x28] sm:$0xff] }
0x3748   :  { %3749 = vmatmul.mubr.msk.f32.vlgmr.msra.gmra.mrb[38].mxu0 %vm248_vm2, %v2999_v12 }
0x3749   :  { %3751 = vmatprep.mubr.msk.f32.mxu0 %vm248_vm2, %v3000_v13 }
0x374c   :  { %3752 = vmatmul.mubr.msk.f32.gmra.mrb[40].mxu0 %vm248_vm2, %v3001_v14 }
0x374d   :  { %3754 = vmatprep.mubr.msk.f32.mxu0 %vm248_vm2, %v3002_v18 }
0x3750   :  { %3755 = vmatmul.mubr.msk.f32.gmra.mrb[42].mxu0 %vm248_vm2, %v3003_v20 }
0x3813   :  { %v2862_v25 = vpop.f32.mrb[36].mxu0 }
0x3814   :  { %v2866_v26 = vadd.f32 %v2862_v25, %v2176_v24  ;;  %v3728_v27 = vpop.f32.mrb[37].mxu0 }
0x3816   :  { %4122 = vtanh.f32 %v2866_v26  ;;  %v3242_v47 = vmul.f32 -1.442695, %v2866_v26 }
0x3818   :  { %4124 = vpow2.f32 %v3242_v47 }
0x381b   :  { %v3750_v29 = vpop.f32.mrb[38].mxu0 }
0x381c   :  { %v3113_v30 = vadd.f32 %v3750_v29, %v4891_v28  ;;  %v3107_v31 = vpop.f32.mrb[39].mxu0 }
0x381d   :  { %v3108_v40 = vadd.f32 %v4891_v28, %v3107_v31 }
0x381e   :  { %3147 = vst [vmem:[#allocation11 + $0x8] sm:$0xff] %v3113_v30 }
0x381f   :  { %3146 = vst [vmem:[#allocation11] sm:$0xff] %v3108_v40  ;;  %v3753_v32 = vpop.f32.mrb[40].mxu0 }
0x3820   :  { %v4123_v33 = vpop.eup %4122  ;;  %v3123_v62 = vadd.f32 %v3753_v32, %v4891_v28  ;;  %v3117_v35 = vpop.f32.mrb[41].mxu0 }
0x3821   :  { %v3118_v36 = vadd.f32 %v4891_v28, %v3117_v35  ;;  %2876 = vrot.lane.b32.xlu0 %v4123_v33, %s4265_s20 }
0x3822   :  { %3149 = vst [vmem:[#allocation11 + $0x18] sm:$0xff] %v3123_v62  ;;  %v4125_v48 = vpop.eup %4124 }
0x3823   :  { %3148 = vst [vmem:[#allocation11 + $0x10] sm:$0xff] %v3118_v36  ;;  %v3756_v45 = vpop.f32.mrb[42].mxu0  ;;  %v2870_v49 = vadd.f32 1.0, %v4125_v48 }
0x3824   :  { %v3133_v61 = vadd.f32 %v3756_v45, %v4891_v28  ;;  %v3127_v23 = vpop.f32.mrb[43].mxu0 }
0x3825   :  { %v3128_v46 = vadd.f32 %v4891_v28, %v3127_v23  ;;  %4126 = vrcp.f32 %v2870_v49 }
0x3826   :  { %3151 = vst [vmem:[#allocation11 + $0x28] sm:$0xff] %v3133_v61 }
0x3827   :  { %3150 = vst [vmem:[#allocation11 + $0x20] sm:$0xff] %v3128_v46 }
0x382f   :  { %v4127_v50 = vpop.eup %4126 }
0x3830   :  { %v2874_v38 = vmul.f32 %v4127_v50, %v4873_v39 }
0x3893   :  { %v2877_v34 = vpop.permute.xlu0 %2876 }
0x3894   :  { %v2879_v51 = vmul.f32 %v4127_v50, %v2877_v34 }
0x3896   :  { %2881 = vrot.lane.b32.xlu1 %v2879_v51, %s4266_s3 }
0x3908   :  { %v2882_v52 = vpop.permute.xlu1 %2881 }
0x3909   :  { %v2884_v53 = vadd.f32 %v2882_v52, %v2874_v38 }
0x390b   :  { %4128 = vtanh.f32 %v2884_v53 }
0x3915   :  { %v4129_v41 = vpop.eup %4128 }
0x3916   :  { %2887 = vrot.lane.b32.xlu0 %v4129_v41, %s4265_s20 }
0x3988   :  { %v2888_v55 = vpop.permute.xlu0 %2887 }
0x3989   :  { %v2890_v44 = vmul.f32 %v4127_v50, %v2888_v55 }
0x398b   :  { %2892 = vrot.lane.b32.xlu1 %v2890_v44, %s4266_s3 }
0x39fd   :  { %v2893_v60 = vpop.permute.xlu1 %2892 }
0x39fe   :  { %2895 = vst.msk [vmem:[#allocation2 + $0x30] sm:$0xff] %vm248_vm2, %v2893_v60  ;;  %3738 = vmatmul.mubr.msk.f32.vlgmr.msra.gmra.mrb[32].mxu1 %vm248_vm2, %v2893_v60 }
0x3a05   :  { %v3004_v63 = vld [vmem:[#allocation2 + $0x30] sm:$0xff] }
0x3a06   :  { %3757 = vmatprep.mubr.msk.f32.mxu0 %vm248_vm2, %v3004_v63 }
0x3ad1   :  { %v2964_v1 = vpop.f32.mrb[32].mxu1 }
0x3ad2   :  { %v2968_v2 = vadd.f32 %v2964_v1, %v2181_v0  ;;  %v3739_v3 = vpop.f32.mrb[33].mxu1 }
0x3ad4   :  { %4130 = vtanh.f32 %v2968_v2  ;;  %v3244_v5 = vmul.f32 -1.442695, %v2968_v2 }
0x3ad6   :  { %4132 = vpow2.f32 %v3244_v5 }
0x3ade   :  { %v4131_v4 = vpop.eup %4130 }
0x3adf   :  { %2978 = vrot.lane.b32.xlu0 %v4131_v4, %s4265_s20 }
0x3ae0   :  { %v4133_v54 = vpop.eup %4132 }
0x3ae1   :  { %v2972_v6 = vadd.f32 1.0, %v4133_v54 }
0x3ae3   :  { %4134 = vrcp.f32 %v2972_v6 }
0x3aed   :  { %v4135_v16 = vpop.eup %4134 }
0x3aee   :  { %v2976_v57 = vmul.f32 %v4135_v16, %v2884_v53 }
0x3b51   :  { %v2979_v15 = vpop.permute.xlu0 %2978 }
0x3b52   :  { %v2981_v10 = vmul.f32 %v4135_v16, %v2979_v15 }
0x3b54   :  { %2983 = vrot.lane.b32.xlu1 %v2981_v10, %s4266_s3 }
0x3bc6   :  { %v2984_v58 = vpop.permute.xlu1 %2983 }
0x3bc7   :  { %v2986_v56 = vadd.f32 %v2984_v58, %v2976_v57 }
0x3bc9   :  { %4136 = vtanh.f32 %v2986_v56 }
0x3bd3   :  { %v4137_v19 = vpop.eup %4136 }
0x3bd4   :  { %2989 = vrot.lane.b32.xlu0 %v4137_v19, %s4265_s20  ;;  %s4226_s20 = scalar_lea.vmem %s3160_s23, 1024 }
0x3bd5   :  { %p4227_p4 = scmp.ne.s32.totalorder %s3160_s23, %s4226_s20  ;;  %p4232_p6 = scmp.lt.s32.totalorder %s4226_s20, %s4226_s20 }
0x3bd7   :  { %p4233_p7 = por %p4232_p6, %p4231_p5 }
0x3bd9   :  { %p4234_p8 = pnand %p4233_p7, %p4227_p4 }
0x3c46   :  { %v2990_v39 = vpop.permute.xlu0 %2989 }
0x3c47   :  { %v2992_v7 = vmul.f32 %v4135_v16, %v2990_v39 }
0x3c49   :  { %2994 = vrot.lane.b32.xlu1 %v2992_v7, %s4266_s3 }
0x3cbb   :  { %v2995_v8 = vpop.permute.xlu1 %2994 }
0x3cbc   :  { %2997 = vst.msk [vmem:[#allocation2 + $0x38] sm:$0xff] %vm248_vm2, %v2995_v8 }
0x3cc3   :  { %v3005_v59 = vld [vmem:[#allocation2 + $0x38] sm:$0xff] }
0x3cc4   :  { %3758 = vmatmul.mubr.msk.f32.gmra.mrb[44].mxu0 %vm248_vm2, %v3005_v59 }
0x3d97   :  { %v3759_v21 = vpop.f32.mrb[44].mxu0 }
0x3d98   :  { %v3143_v43 = vadd.f32 %v3759_v21, %v4891_v28  ;;  %v3137_v22 = vpop.f32.mrb[45].mxu0 }
0x3d99   :  { %v3138_v37 = vadd.f32 %v4891_v28, %v3137_v22 }
0x3d9a   :  { %3153 = vst [vmem:[#allocation11 + $0x38] sm:$0xff] %v3143_v43 }
0x3d9b   :  { %3152 = vst [vmem:[#allocation11 + $0x30] sm:$0xff] %v3138_v37 }
0x3d9c   :  { %4237 = shalt.err (!%p4234_p8)
}
0x3d9d   :  { %s4238_s14 = scalar_lea.hbm %s4944_s12, 1024 }
0x3d9e   :  { %p4239_p9 = scmp.ne.s32.totalorder %s4944_s12, %s4238_s14  ;;  %p4242_p10 = scmp.lt.u32.totalorder %s4238_s14, %s4944_s12 }
0x3da0   :  { %p4244_p11 = pnand %p4242_p10, %p4239_p9 }
0x3da2   :  { %4247 = shalt.err (!%p4244_p11)
}
0x3da3   :  { %3165 = dma.vmem_to_hbm [thread:$0]  %s3160_s23, 1024, %s4944_s12, [#allocation5], %s4258_s15, %s4258_s15, %s4259_s16  }
0x3da4   :  { %4254 = dma.done.wait [#allocation5], 1024  }
0x3da5   :  { %4255 = vsyncadd [#allocation5], 4294966272 }
0x3da6   :  { %3169 = vsyncpa [#allocation4], 1 }
0x3da7   :  { %3170 = vsyncpa [#allocation7], 1 }
0x3da8   :  { %3171 = vsyncpa [#allocation10], 1 }
0x3da9   :  { %3172 = vsyncpa [#allocation5], 1 }

</bundles_post_ra>
